<compile_context>
chip_gen: v7x
topology: tpu7x:2x2x1
jax: 0.10.0
libtpu: 0.0.40
codegen_flags: <defaults>
</compile_context>

<pallas_src>
import jax
import jax.numpy as jnp
from jax.experimental import pallas as pl
from jax.experimental.pallas import tpu as pltpu

# ---- model hyper-parameters (small, consistent with the module's __init__) ----
PAD = 0
N_LAYER = 2
N_HEAD = 2
D_MODEL = 32
D_HEAD = 16
D_INNER = 64
HD = N_HEAD * D_HEAD          # n_head * d_head = 32
P_PAD = 128                   # lane-padded relative-position slab (sinusoids at rows 1..2L-1)
NEG_INF = -1e30               # additive mask value (finite: avoids 0/0 NaN on all-pad rows)
LN_EPS = 1e-5

# rows of the packed small-parameter buffer [N_LAYER, N_SMALL, SMALL_W]
SMALL_W = max(3 * HD, D_INNER)        # 96
(ROW_BQKV, ROW_RWB, ROW_RRB, ROW_BFC, ROW_LN1G, ROW_LN1B,
 ROW_B1, ROW_B2, ROW_LN2G, ROW_LN2B, N_SMALL) = range(11)


def _layernorm(x, g, b):
    mu = jnp.mean(x, axis=-1, keepdims=True)
    var = jnp.mean((x - mu) ** 2, axis=-1, keepdims=True)
    return (x - mu) * jax.lax.rsqrt(var + LN_EPS) * g + b


def rel_encoder_kernel(
    x_ref, npad_ref, kbias_ref, pos_ref,
    wqkvr_ref, wfc_ref, w1_ref, w2_ref, small_ref,
    out_ref, attn_ref,
):
    N, D = x_ref.shape                  # N = B * L (batch folded into matmul rows)
    G, _, L = kbias_ref.shape           # G = N_HEAD * B (head-major), g = h*B + b
    B = G // N_HEAD
    Ppad = pos_ref.shape[0]             # 128 (lane-padded relative positions)
    scale = 1.0 / (D_HEAD ** 0.5)

    x = x_ref[...]                      # [N, D]  f32 residual stream (resident across layers)
    npad = npad_ref[...]                # [N, 1]  f32 non-pad row mask
    kbias = kbias_ref[...]              # [G, 1, L] f32 additive key-pad bias (layer-invariant)
    pos = pos_ref[...]                  # [Ppad, D] bf16 sinusoids at rows 1..2L-1

    def to_heads(a):                    # [N, HD] -> [G, L, dh], g = h*B + b
        a3 = a.reshape(B, L, HD)
        return jnp.concatenate(
            [a3[:, :, h * D_HEAD:(h + 1) * D_HEAD] for h in range(N_HEAD)], axis=0)

    attn_last = None
    for l in range(N_LAYER):            # layers fused: x never leaves VMEM
        small = small_ref[l]            # [N_SMALL, SMALL_W] f32 packed tiny params

        # ---- fused [x ; pos] @ [Wq|Wk|Wv|Wr]: ONE bf16 MXU matmul with a 128-lane RHS ----
        xin = jnp.concatenate([x.astype(jnp.bfloat16), pos], axis=0)        # [N+Ppad, D]
        y = jnp.dot(xin, wqkvr_ref[l], preferred_element_type=jnp.float32)  # [N+Ppad, 4*HD]
        qkv = y[:N, :3 * HD] + small[ROW_BQKV:ROW_BQKV + 1, :3 * HD]        # [N, 3*HD]
        r = y[N:, 3 * HD:4 * HD].astype(jnp.bfloat16)                       # [Ppad, HD]

        # fold 1/sqrt(d_head) into the q-side operands (never scale the [G,L,L] scores)
        q_all = qkv[:, :HD] * scale
        k_all = qkv[:, HD:2 * HD]
        v_all = qkv[:, 2 * HD:3 * HD]
        rwb = small[ROW_RWB:ROW_RWB + 1, :HD] * scale       # r_w_bias (head-major flat)
        rrb = small[ROW_RRB:ROW_RRB + 1, :HD] * scale       # r_r_bias

        qw = (q_all + rwb).astype(jnp.bfloat16)             # [N, HD]
        qr = (q_all + rrb).astype(jnp.bfloat16)             # [N, HD]
        qw_g = to_heads(qw)                                  # [G, L, dh]
        k_g = to_heads(k_all.astype(jnp.bfloat16))
        v_g = to_heads(v_all.astype(jnp.bfloat16))

        # ---- content term: (q + r_w_bias) K^T, heads batched ----
        ac = jnp.einsum('gid,gjd->gij', qw_g, k_g,
                        preferred_element_type=jnp.float32)  # [G, L, L]

        # ---- position term: per-head flat matmuls (R shared across batch), then rel-shift --
        bdf = jnp.concatenate(
            [jnp.einsum('nd,pd->np',
                        qr[:, h * D_HEAD:(h + 1) * D_HEAD],
                        r[:, h * D_HEAD:(h + 1) * D_HEAD],
                        preferred_element_type=jnp.float32).reshape(B, L, Ppad)
             for h in range(N_HEAD)], axis=0)                # [G, L, Ppad]
        # TXL rel-shift: query row i needs the window starting at lane (L - i)
        # (sinusoids occupy lanes 1..2L-1).  Strided XLU lane-rotate + static slice.
        bd = pltpu.roll(bdf, Ppad - L, 2, stride=1, stride_axis=1)[:, :, :L]   # [G, L, L]

        scores = ac + bd + kbias                             # scale already folded into q

        # ---- masked softmax over keys (f32; exp on EUP) ----
        m = jnp.max(scores, axis=-1, keepdims=True)
        p = jnp.exp(scores - m)
        s = jnp.sum(p, axis=-1, keepdims=True)
        attn = p / s                                         # exact: attn is returned

        # ---- attention output, head merge, output projection, post-LN, non-pad mask ----
        ctx_g = jnp.einsum('gij,gjd->gid', attn.astype(jnp.bfloat16), v_g,
                           preferred_element_type=jnp.float32)          # [G, L, dh]
        ctx = jnp.concatenate(
            [ctx_g[h * B:(h + 1) * B] for h in range(N_HEAD)], axis=-1)  # [B, L, HD]
        ctx = ctx.reshape(N, HD)

        o = jnp.dot(ctx.astype(jnp.bfloat16), wfc_ref[l],
                    preferred_element_type=jnp.float32)
        o = o + small[ROW_BFC:ROW_BFC + 1, :D]
        o = _layernorm(o + x, small[ROW_LN1G:ROW_LN1G + 1, :D],
                       small[ROW_LN1B:ROW_LN1B + 1, :D])
        o = o * npad

        # ---- position-wise FFN: Linear -> ReLU -> Linear, residual, LN, non-pad mask ----
        h1 = jnp.dot(o.astype(jnp.bfloat16), w1_ref[l],
                     preferred_element_type=jnp.float32)
        h1 = jnp.maximum(h1 + small[ROW_B1:ROW_B1 + 1, :D_INNER], 0.0)
        h2 = jnp.dot(h1.astype(jnp.bfloat16), w2_ref[l],
                     preferred_element_type=jnp.float32)
        h2 = h2 + small[ROW_B2:ROW_B2 + 1, :D]
        x = _layernorm(h2 + o, small[ROW_LN2G:ROW_LN2G + 1, :D],
                       small[ROW_LN2B:ROW_LN2B + 1, :D])
        x = x * npad

        if l == N_LAYER - 1:
            attn_last = attn             # only the last layer's attn is returned

    out_ref[...] = x                     # [N, D]    natural layout; wrapper -> [B, L, D]
    attn_ref[...] = attn_last            # [G, L, L] natural layout; wrapper -> [B, H, L, L]


def _full_spec(shape):
    n = len(shape)
    return pl.BlockSpec(shape, lambda *_, n=n: (0,) * n)


def rel_encoder_pallas(x2d, npad, kbias, pos_pad, packed):
    N, D = x2d.shape
    G, _, L = kbias.shape

    in_arrays = (x2d, npad, kbias, pos_pad,
                 packed["Wqkvr"], packed["Wfc"], packed["W1"], packed["W2"],
                 packed["small"])
    in_specs = [_full_spec(a.shape) for a in in_arrays]
    out_shapes = [
        jax.ShapeDtypeStruct((N, D), jnp.float32),
        jax.ShapeDtypeStruct((G, L, L), jnp.float32),
    ]
    out_specs = [_full_spec(s.shape) for s in out_shapes]

    return pl.pallas_call(
        rel_encoder_kernel,
        out_shape=out_shapes,
        grid_spec=pltpu.PrefetchScalarGridSpec(
            num_scalar_prefetch=0,
            grid=(1,),                    # whole (tiny) problem in one step
            in_specs=in_specs,
            out_specs=out_specs,
        ),
        compiler_params=pltpu.CompilerParams(
            dimension_semantics=("arbitrary",)),
    )(*in_arrays)


@jax.jit
def rel_encoder_forward(src_seq, emb_table, packed):
    """src_seq: [B, L] int32 token ids. Returns (enc_out [B,L,D], attn [B,H,L,L])."""
    B, L = src_seq.shape
    D = emb_table.shape[1]
    N = B * L
    assert 2 * L <= P_PAD, "sequence too long for the 128-lane relative-position slab"

    # get_non_pad_mask / get_attn_key_pad_mask, shipped only at O(B*L)
    non_pad = (src_seq != PAD).astype(jnp.float32)                              # [B, L]
    npad = non_pad.reshape(N, 1)
    kbias = jnp.tile(((1.0 - non_pad) * NEG_INF)[:, None, :], (N_HEAD, 1, 1))   # [G, 1, L]

    # word embedding lookup (glue), flattened to the kernel's token-row layout
    x = jnp.take(emb_table, src_seq, axis=0).reshape(N, D)                      # [N, D]

    # sinusoidal positional embedding over pos_seq = arange(L-1, -L, -1), placed at rows
    # 1..2L-1 of a 128-row slab (one leading zero row -> rel-shift window starts at L - i)
    pos_seq = jnp.arange(L - 1, -L, -1.0, dtype=jnp.float32)                    # [2L-1]
    inv_freq = 1.0 / (10000.0 ** (jnp.arange(0, D, 2, dtype=jnp.float32) / D))
    sinus = pos_seq[:, None] * inv_freq[None, :]
    pos_emb = jnp.concatenate([jnp.sin(sinus), jnp.cos(sinus)], axis=-1)        # [2L-1, D]
    pos_pad = jnp.zeros((P_PAD, D), jnp.float32).at[1:2 * L].set(pos_emb)
    pos_pad = pos_pad.astype(jnp.bfloat16)

    out2d, attn_g = rel_encoder_pallas(x, npad, kbias, pos_pad, packed)
    enc_out = out2d.reshape(B, L, D)
    attn = attn_g.reshape(N_HEAD, B, L, L).transpose(1, 0, 2, 3)                # [B, H, L, L]
    return enc_out, attn  # attn.detach() is a no-op in JAX


# ---------------- parameter construction / packing ----------------

def init_layer_params(key):
    ks = jax.random.split(key, 9)

    def lin(k, fan_in, fan_out):
        # ~ PyTorch default nn.Linear weight scale (1/sqrt(fan_in))
        return jax.random.normal(k, (fan_in, fan_out), jnp.float32) * (fan_in ** -0.5)

    return dict(
        Wq=lin(ks[0], D_MODEL, HD), bq=jnp.zeros((HD,), jnp.float32),
        Wk=lin(ks[1], D_MODEL, HD), bk=jnp.zeros((HD,), jnp.float32),
        Wv=lin(ks[2], D_MODEL, HD), bv=jnp.zeros((HD,), jnp.float32),
        Wr=lin(ks[3], D_MODEL, HD),
        rwb=jax.random.normal(ks[4], (N_HEAD, D_HEAD), jnp.float32) * 0.1,   # r_w_bias
        rrb=jax.random.normal(ks[5], (N_HEAD, D_HEAD), jnp.float32) * 0.1,   # r_r_bias
        Wfc=lin(ks[6], HD, D_MODEL), bfc=jnp.zeros((D_MODEL,), jnp.float32),
        ln1g=jnp.ones((D_MODEL,), jnp.float32), ln1b=jnp.zeros((D_MODEL,), jnp.float32),
        W1=lin(ks[7], D_MODEL, D_INNER), b1=jnp.zeros((D_INNER,), jnp.float32),
        W2=lin(ks[8], D_INNER, D_MODEL), b2=jnp.zeros((D_MODEL,), jnp.float32),
        ln2g=jnp.ones((D_MODEL,), jnp.float32), ln2b=jnp.zeros((D_MODEL,), jnp.float32),
    )


def _pad_row(v):
    return jnp.pad(v, (0, SMALL_W - v.shape[0]))


def pack_params(layer_params):
    """Stack per-layer params: big weights -> bf16 stacked buffers, tiny params -> one f32
    buffer; Wq/Wk/Wv/Wr are column-concatenated into one 128-lane weight."""
    def small_rows(p):
        rows = [None] * N_SMALL
        rows[ROW_BQKV] = jnp.concatenate([p["bq"], p["bk"], p["bv"]])
        rows[ROW_RWB] = p["rwb"].reshape(-1)
        rows[ROW_RRB] = p["rrb"].reshape(-1)
        rows[ROW_BFC] = p["bfc"]
        rows[ROW_LN1G] = p["ln1g"]
        rows[ROW_LN1B] = p["ln1b"]
        rows[ROW_B1] = p["b1"]
        rows[ROW_B2] = p["b2"]
        rows[ROW_LN2G] = p["ln2g"]
        rows[ROW_LN2B] = p["ln2b"]
        return jnp.stack([_pad_row(r) for r in rows])                 # [N_SMALL, SMALL_W]

    bf = jnp.bfloat16
    return dict(
        Wqkvr=jnp.stack([jnp.concatenate([p["Wq"], p["Wk"], p["Wv"], p["Wr"]], axis=1)
                         for p in layer_params]).astype(bf),          # [NL, D, 4*HD] = [., 32, 128]
        Wfc=jnp.stack([p["Wfc"] for p in layer_params]).astype(bf),   # [NL, HD, D]
        W1=jnp.stack([p["W1"] for p in layer_params]).astype(bf),     # [NL, D, D_INNER]
        W2=jnp.stack([p["W2"] for p in layer_params]).astype(bf),     # [NL, D_INNER, D]
        small=jnp.stack([small_rows(p) for p in layer_params]),       # [NL, N_SMALL, SMALL_W] f32
    )


# ---------------- plain-JAX reference (gather-based rel-shift) for a numerical cross-check ---

def reference_forward(src_seq, emb_table, layer_params):
    """Mirrors the torch module's math (per-head einsums, gather-based rel-shift, post-LN,
    additive key-pad mask) with the kernel's bf16 operand rounding emulated at the same
    points, so the comparison tolerances can stay tight."""
    bf = lambda t: t.astype(jnp.bfloat16).astype(jnp.float32)
    B, L = src_seq.shape
    scale = 1.0 / (D_HEAD ** 0.5)

    non_pad = (src_seq != PAD).astype(jnp.float32)[..., None]                      # [B, L, 1]
    key_bias = ((src_seq == PAD).astype(jnp.float32) * NEG_INF)[:, None, None, :]  # [B,1,1,L]

    x = jnp.take(emb_table, src_seq, axis=0)                                       # [B, L, D]

    pos_seq = jnp.arange(L - 1, -L, -1.0, dtype=jnp.float32)
    inv_freq = 1.0 / (10000.0 ** (jnp.arange(0, D_MODEL, 2, dtype=jnp.float32) / D_MODEL))
    sinus = pos_seq[:, None] * inv_freq[None, :]
    pos_emb = jnp.concatenate([jnp.sin(sinus), jnp.cos(sinus)], axis=-1)           # [2L-1, D]

    idx = jnp.arange(L)
    rel = (L - 1) - idx[:, None] + idx[None, :]                                    # [L, L]
    rel_idx = jnp.broadcast_to(rel[None, None], (B, N_HEAD, L, L))

    attn = None
    for p in layer_params:
        q = bf(x) @ bf(p["Wq"]) + p["bq"]
        k = bf(x) @ bf(p["Wk"]) + p["bk"]
        v = bf(x) @ bf(p["Wv"]) + p["bv"]
        r = bf(pos_emb) @ bf(p["Wr"])                                              # [2L-1, HD]

        qh = q.reshape(B, L, N_HEAD, D_HEAD)
        kh = bf(k).reshape(B, L, N_HEAD, D_HEAD)
        vh = bf(v).reshape(B, L, N_HEAD, D_HEAD)
        rh = bf(r).reshape(2 * L - 1, N_HEAD, D_HEAD)

        qw = bf((qh + p["rwb"]) * scale)
        qr = bf((qh + p["rrb"]) * scale)

        ac = jnp.einsum('bihd,bjhd->bhij', qw, kh)
        bdf = jnp.einsum('bihd,phd->bhip', qr, rh)                                 # [B,H,L,2L-1]
        bd = jnp.take_along_axis(bdf, rel_idx, axis=-1)                            # [B,H,L,L]

        scores = ac + bd + key_bias
        m = jnp.max(scores, axis=-1, keepdims=True)
        e = jnp.exp(scores - m)
        attn = e / jnp.sum(e, axis=-1, keepdims=True)                              # [B,H,L,L]

        ctx = jnp.einsum('bhij,bjhd->bihd', bf(attn), vh).reshape(B, L, HD)
        o = bf(ctx) @ bf(p["Wfc"]) + p["bfc"]
        o = _layernorm(o + x, p["ln1g"], p["ln1b"]) * non_pad
        h1 = jnp.maximum(bf(o) @ bf(p["W1"]) + p["b1"], 0.0)
        h2 = bf(h1) @ bf(p["W2"]) + p["b2"]
        x = _layernorm(h2 + o, p["ln2g"], p["ln2b"]) * non_pad
    return x, attn


if __name__ == "__main__":
    key = jax.random.PRNGKey(0)
    B, L, VOCAB = 2, 8, 50
    k_seq, k_emb, k_layers = jax.random.split(key, 3)

    src_seq = jax.random.randint(k_seq, (B, L), 1, VOCAB, dtype=jnp.int32)
    src_seq = src_seq.at[1, -2:].set(PAD)   # a couple of PAD tokens to exercise masking

    emb_table = jax.random.normal(k_emb, (VOCAB, D_MODEL), jnp.float32) * (D_MODEL ** -0.5)
    emb_table = emb_table.at[PAD].set(0.0)  # padding_idx=0 embedding row

    layer_params = [init_layer_params(k) for k in jax.random.split(k_layers, N_LAYER)]
    packed = pack_params(layer_params)

    enc_out, attn = rel_encoder_forward(src_seq, emb_table, packed)
    jax.block_until_ready((enc_out, attn))

    assert enc_out.shape == (B, L, D_MODEL)
    assert attn.shape == (B, N_HEAD, L, L)
    assert bool(jnp.all(jnp.isfinite(enc_out))) and bool(jnp.all(jnp.isfinite(attn)))

    # cross-check against the gather-based plain-JAX reference (same bf16 rounding points,
    # completely different rel-shift / projection code path)
    ref_out, ref_attn = reference_forward(src_seq, emb_table, layer_params)
    assert float(jnp.max(jnp.abs(attn - ref_attn))) < 1e-2
    assert float(jnp.max(jnp.abs(enc_out - ref_out))) < 5e-2

    print("KERNEL_OK")
</pallas_src>

<mosaic_0001>
module attributes {stable_mosaic.version = 11 : i64} {
  func.func @rel_encoder_kernel(%arg0: i32, %arg1: memref<16x32xf32, #tpu.memory_space<vmem>>, %arg2: memref<16x1xf32, #tpu.memory_space<vmem>>, %arg3: memref<4x1x8xf32, #tpu.memory_space<vmem>>, %arg4: memref<128x32xbf16, #tpu.memory_space<vmem>>, %arg5: memref<2x32x128xbf16, #tpu.memory_space<vmem>>, %arg6: memref<2x32x32xbf16, #tpu.memory_space<vmem>>, %arg7: memref<2x32x64xbf16, #tpu.memory_space<vmem>>, %arg8: memref<2x64x32xbf16, #tpu.memory_space<vmem>>, %arg9: memref<2x10x96xf32, #tpu.memory_space<vmem>>, %arg10: memref<16x32xf32, #tpu.memory_space<vmem>>, %arg11: memref<4x8x8xf32, #tpu.memory_space<vmem>>) attributes {dimension_semantics = [#tpu.dimension_semantics<arbitrary>], iteration_bounds = array<i64: 1>, scalar_prefetch = 0 : i64, scratch_operands = 0 : i64, tpu.core_type = #tpu.core_type<tc>, window_params = [{pipeline_mode = #tpu.pipeline_mode<synchronous>, transform_indices = @transform_0, window_bounds = array<i64: 16, 32>}, {pipeline_mode = #tpu.pipeline_mode<synchronous>, transform_indices = @transform_1, window_bounds = array<i64: 16, 1>}, {pipeline_mode = #tpu.pipeline_mode<synchronous>, transform_indices = @transform_2, window_bounds = array<i64: 4, 1, 8>}, {pipeline_mode = #tpu.pipeline_mode<synchronous>, transform_indices = @transform_3, window_bounds = array<i64: 128, 32>}, {pipeline_mode = #tpu.pipeline_mode<synchronous>, transform_indices = @transform_4, window_bounds = array<i64: 2, 32, 128>}, {pipeline_mode = #tpu.pipeline_mode<synchronous>, transform_indices = @transform_5, window_bounds = array<i64: 2, 32, 32>}, {pipeline_mode = #tpu.pipeline_mode<synchronous>, transform_indices = @transform_6, window_bounds = array<i64: 2, 32, 64>}, {pipeline_mode = #tpu.pipeline_mode<synchronous>, transform_indices = @transform_7, window_bounds = array<i64: 2, 64, 32>}, {pipeline_mode = #tpu.pipeline_mode<synchronous>, transform_indices = @transform_8, window_bounds = array<i64: 2, 10, 96>}, {pipeline_mode = #tpu.pipeline_mode<synchronous>, transform_indices = @transform_9, window_bounds = array<i64: 16, 32>}, {pipeline_mode = #tpu.pipeline_mode<synchronous>, transform_indices = @transform_10, window_bounds = array<i64: 4, 8, 8>}]} {
    %c0 = arith.constant 0 : index
    %c0_0 = arith.constant 0 : index
    %0 = vector.load %arg1[%c0, %c0_0] : memref<16x32xf32, #tpu.memory_space<vmem>>, vector<16x32xf32>
    %c0_1 = arith.constant 0 : index
    %c0_2 = arith.constant 0 : index
    %1 = vector.load %arg2[%c0_1, %c0_2] : memref<16x1xf32, #tpu.memory_space<vmem>>, vector<16x1xf32>
    %c0_3 = arith.constant 0 : index
    %c0_4 = arith.constant 0 : index
    %c0_5 = arith.constant 0 : index
    %2 = vector.load %arg3[%c0_3, %c0_4, %c0_5] : memref<4x1x8xf32, #tpu.memory_space<vmem>>, vector<4x1x8xf32>
    %c0_6 = arith.constant 0 : index
    %c0_7 = arith.constant 0 : index
    %3 = vector.load %arg4[%c0_6, %c0_7] : memref<128x32xbf16, #tpu.memory_space<vmem>>, vector<128x32xbf16>
    %c0_8 = arith.constant 0 : index
    %c0_9 = arith.constant 0 : index
    %c0_10 = arith.constant 0 : index
    %4 = vector.load %arg9[%c0_8, %c0_9, %c0_10] : memref<2x10x96xf32, #tpu.memory_space<vmem>>, vector<1x10x96xf32>
    %5 = vector.shape_cast %4 : vector<1x10x96xf32> to vector<10x96xf32>
    %6 = arith.truncf %0 : vector<16x32xf32> to vector<16x32xbf16>
    %7 = tpu.concatenate %6, %3 in 0 : vector<16x32xbf16>, vector<128x32xbf16> -> vector<144x32xbf16>
    %c0_11 = arith.constant 0 : index
    %c0_12 = arith.constant 0 : index
    %c0_13 = arith.constant 0 : index
    %8 = vector.load %arg5[%c0_11, %c0_12, %c0_13] : memref<2x32x128xbf16, #tpu.memory_space<vmem>>, vector<1x32x128xbf16>
    %9 = vector.shape_cast %8 : vector<1x32x128xbf16> to vector<32x128xbf16>
    %cst = arith.constant dense<0.000000e+00> : vector<144x128xf32>
    %10 = tpu.matmul %7, %9, %cst {dimension_numbers = #tpu.dot_dimension_numbers<[1], [0], [0], [1], [0, 0, 1, 1], [], []>} : vector<144x32xbf16>, vector<32x128xbf16>, vector<144x128xf32> -> vector<144x128xf32>
    %11 = vector.extract_strided_slice %10 {offsets = [0, 0], sizes = [16, 96], strides = [1, 1]} : vector<144x128xf32> to vector<16x96xf32>
    %12 = vector.extract_strided_slice %5 {offsets = [0, 0], sizes = [1, 96], strides = [1, 1]} : vector<10x96xf32> to vector<1x96xf32>
    %13 = vector.broadcast %12 : vector<1x96xf32> to vector<16x96xf32>
    %14 = arith.addf %11, %13 : vector<16x96xf32>
    %15 = vector.extract_strided_slice %10 {offsets = [16, 96], sizes = [128, 32], strides = [1, 1]} : vector<144x128xf32> to vector<128x32xf32>
    %16 = arith.truncf %15 : vector<128x32xf32> to vector<128x32xbf16>
    %17 = vector.extract_strided_slice %14 {offsets = [0, 0], sizes = [16, 32], strides = [1, 1]} : vector<16x96xf32> to vector<16x32xf32>
    %cst_14 = arith.constant 2.500000e-01 : f32
    %18 = vector.broadcast %cst_14 : f32 to vector<16x32xf32>
    %19 = arith.mulf %17, %18 : vector<16x32xf32>
    %20 = vector.extract_strided_slice %14 {offsets = [0, 32], sizes = [16, 32], strides = [1, 1]} : vector<16x96xf32> to vector<16x32xf32>
    %21 = vector.extract_strided_slice %14 {offsets = [0, 64], sizes = [16, 32], strides = [1, 1]} : vector<16x96xf32> to vector<16x32xf32>
    %22 = vector.extract_strided_slice %5 {offsets = [1, 0], sizes = [1, 32], strides = [1, 1]} : vector<10x96xf32> to vector<1x32xf32>
    %cst_15 = arith.constant 2.500000e-01 : f32
    %23 = vector.broadcast %cst_15 : f32 to vector<1x32xf32>
    %24 = arith.mulf %22, %23 : vector<1x32xf32>
    %25 = vector.extract_strided_slice %5 {offsets = [2, 0], sizes = [1, 32], strides = [1, 1]} : vector<10x96xf32> to vector<1x32xf32>
    %cst_16 = arith.constant 2.500000e-01 : f32
    %26 = vector.broadcast %cst_16 : f32 to vector<1x32xf32>
    %27 = arith.mulf %25, %26 : vector<1x32xf32>
    %28 = vector.broadcast %24 : vector<1x32xf32> to vector<16x32xf32>
    %29 = arith.addf %19, %28 : vector<16x32xf32>
    %30 = arith.truncf %29 : vector<16x32xf32> to vector<16x32xbf16>
    %31 = vector.broadcast %27 : vector<1x32xf32> to vector<16x32xf32>
    %32 = arith.addf %19, %31 : vector<16x32xf32>
    %33 = arith.truncf %32 : vector<16x32xf32> to vector<16x32xbf16>
    %34 = vector.shape_cast %30 : vector<16x32xbf16> to vector<2x8x32xbf16>
    %35 = vector.extract_strided_slice %34 {offsets = [0, 0, 0], sizes = [2, 8, 16], strides = [1, 1, 1]} : vector<2x8x32xbf16> to vector<2x8x16xbf16>
    %36 = vector.extract_strided_slice %34 {offsets = [0, 0, 16], sizes = [2, 8, 16], strides = [1, 1, 1]} : vector<2x8x32xbf16> to vector<2x8x16xbf16>
    %37 = tpu.concatenate %35, %36 in 0 : vector<2x8x16xbf16>, vector<2x8x16xbf16> -> vector<4x8x16xbf16>
    %38 = arith.truncf %20 : vector<16x32xf32> to vector<16x32xbf16>
    %39 = vector.shape_cast %38 : vector<16x32xbf16> to vector<2x8x32xbf16>
    %40 = vector.extract_strided_slice %39 {offsets = [0, 0, 0], sizes = [2, 8, 16], strides = [1, 1, 1]} : vector<2x8x32xbf16> to vector<2x8x16xbf16>
    %41 = vector.extract_strided_slice %39 {offsets = [0, 0, 16], sizes = [2, 8, 16], strides = [1, 1, 1]} : vector<2x8x32xbf16> to vector<2x8x16xbf16>
    %42 = tpu.concatenate %40, %41 in 0 : vector<2x8x16xbf16>, vector<2x8x16xbf16> -> vector<4x8x16xbf16>
    %43 = arith.truncf %21 : vector<16x32xf32> to vector<16x32xbf16>
    %44 = vector.shape_cast %43 : vector<16x32xbf16> to vector<2x8x32xbf16>
    %45 = vector.extract_strided_slice %44 {offsets = [0, 0, 0], sizes = [2, 8, 16], strides = [1, 1, 1]} : vector<2x8x32xbf16> to vector<2x8x16xbf16>
    %46 = vector.extract_strided_slice %44 {offsets = [0, 0, 16], sizes = [2, 8, 16], strides = [1, 1, 1]} : vector<2x8x32xbf16> to vector<2x8x16xbf16>
    %47 = tpu.concatenate %45, %46 in 0 : vector<2x8x16xbf16>, vector<2x8x16xbf16> -> vector<4x8x16xbf16>
    "tpu.trace_start"() <{level = 10 : i32, message = "gid,gjd->gij"}> : () -> ()
    %cst_17 = arith.constant dense<0.000000e+00> : vector<4x8x8xf32>
    %48 = tpu.matmul %37, %42, %cst_17 {dimension_numbers = #tpu.dot_dimension_numbers<[2], [2], [1], [1], [0, 0, 0, 1, 1, 1], [0], [0]>} : vector<4x8x16xbf16>, vector<4x8x16xbf16>, vector<4x8x8xf32> -> vector<4x8x8xf32>
    "tpu.trace_stop"() : () -> ()
    %49 = vector.extract_strided_slice %33 {offsets = [0, 0], sizes = [16, 16], strides = [1, 1]} : vector<16x32xbf16> to vector<16x16xbf16>
    %50 = vector.extract_strided_slice %16 {offsets = [0, 0], sizes = [128, 16], strides = [1, 1]} : vector<128x32xbf16> to vector<128x16xbf16>
    "tpu.trace_start"() <{level = 10 : i32, message = "nd,pd->np"}> : () -> ()
    %cst_18 = arith.constant dense<0.000000e+00> : vector<16x128xf32>
    %51 = tpu.matmul %49, %50, %cst_18 {dimension_numbers = #tpu.dot_dimension_numbers<[1], [1], [0], [0], [0, 0, 1, 0], [], []>} : vector<16x16xbf16>, vector<128x16xbf16>, vector<16x128xf32> -> vector<16x128xf32>
    "tpu.trace_stop"() : () -> ()
    %52 = vector.shape_cast %51 : vector<16x128xf32> to vector<2x8x128xf32>
    %53 = vector.extract_strided_slice %33 {offsets = [0, 16], sizes = [16, 16], strides = [1, 1]} : vector<16x32xbf16> to vector<16x16xbf16>
    %54 = vector.extract_strided_slice %16 {offsets = [0, 16], sizes = [128, 16], strides = [1, 1]} : vector<128x32xbf16> to vector<128x16xbf16>
    "tpu.trace_start"() <{level = 10 : i32, message = "nd,pd->np"}> : () -> ()
    %cst_19 = arith.constant dense<0.000000e+00> : vector<16x128xf32>
    %55 = tpu.matmul %53, %54, %cst_19 {dimension_numbers = #tpu.dot_dimension_numbers<[1], [1], [0], [0], [0, 0, 1, 0], [], []>} : vector<16x16xbf16>, vector<128x16xbf16>, vector<16x128xf32> -> vector<16x128xf32>
    "tpu.trace_stop"() : () -> ()
    %56 = vector.shape_cast %55 : vector<16x128xf32> to vector<2x8x128xf32>
    %57 = tpu.concatenate %52, %56 in 0 : vector<2x8x128xf32>, vector<2x8x128xf32> -> vector<4x8x128xf32>
    %c120_i32 = arith.constant 120 : i32
    %58 = tpu.dynamic_rotate %57 by %c120_i32 dim 2 {stride = 1 : si32, stride_dimension = 1 : si32} : vector<4x8x128xf32>, i32 -> vector<4x8x128xf32>
    %59 = vector.extract_strided_slice %58 {offsets = [0, 0, 0], sizes = [4, 8, 8], strides = [1, 1, 1]} : vector<4x8x128xf32> to vector<4x8x8xf32>
    %60 = arith.addf %48, %59 : vector<4x8x8xf32>
    %61 = vector.broadcast %2 : vector<4x1x8xf32> to vector<4x8x8xf32>
    %62 = arith.addf %60, %61 : vector<4x8x8xf32>
    %cst_20 = arith.constant dense<0xFF800000> : vector<4x8xf32>
    %63 = vector.multi_reduction <maximumf>, %62, %cst_20 [2] : vector<4x8x8xf32> to vector<4x8xf32>
    %64 = vector.shape_cast %63 : vector<4x8xf32> to vector<4x8x1xf32>
    %65 = vector.broadcast %64 : vector<4x8x1xf32> to vector<4x8x8xf32>
    %66 = arith.subf %62, %65 : vector<4x8x8xf32>
    %67 = math.exp %66 : vector<4x8x8xf32>
    %cst_21 = arith.constant dense<0.000000e+00> : vector<4x8xf32>
    %68 = vector.multi_reduction <add>, %67, %cst_21 [2] : vector<4x8x8xf32> to vector<4x8xf32>
    %69 = vector.shape_cast %68 : vector<4x8xf32> to vector<4x8x1xf32>
    %70 = vector.broadcast %69 : vector<4x8x1xf32> to vector<4x8x8xf32>
    %71 = arith.divf %67, %70 : vector<4x8x8xf32>
    %72 = arith.truncf %71 : vector<4x8x8xf32> to vector<4x8x8xbf16>
    "tpu.trace_start"() <{level = 10 : i32, message = "gij,gjd->gid"}> : () -> ()
    %cst_22 = arith.constant dense<0.000000e+00> : vector<4x8x16xf32>
    %73 = tpu.matmul %72, %47, %cst_22 {dimension_numbers = #tpu.dot_dimension_numbers<[2], [1], [1], [2], [0, 0, 0, 1, 1, 2], [0], [0]>} : vector<4x8x8xbf16>, vector<4x8x16xbf16>, vector<4x8x16xf32> -> vector<4x8x16xf32>
    "tpu.trace_stop"() : () -> ()
    %74 = vector.extract_strided_slice %73 {offsets = [0, 0, 0], sizes = [2, 8, 16], strides = [1, 1, 1]} : vector<4x8x16xf32> to vector<2x8x16xf32>
    %75 = vector.extract_strided_slice %73 {offsets = [2, 0, 0], sizes = [2, 8, 16], strides = [1, 1, 1]} : vector<4x8x16xf32> to vector<2x8x16xf32>
    %76 = tpu.concatenate %74, %75 in 2 : vector<2x8x16xf32>, vector<2x8x16xf32> -> vector<2x8x32xf32>
    %77 = vector.shape_cast %76 : vector<2x8x32xf32> to vector<16x32xf32>
    %78 = arith.truncf %77 : vector<16x32xf32> to vector<16x32xbf16>
    %c0_23 = arith.constant 0 : index
    %c0_24 = arith.constant 0 : index
    %c0_25 = arith.constant 0 : index
    %79 = vector.load %arg6[%c0_23, %c0_24, %c0_25] : memref<2x32x32xbf16, #tpu.memory_space<vmem>>, vector<1x32x32xbf16>
    %80 = vector.shape_cast %79 : vector<1x32x32xbf16> to vector<32x32xbf16>
    %cst_26 = arith.constant dense<0.000000e+00> : vector<16x32xf32>
    %81 = tpu.matmul %78, %80, %cst_26 {dimension_numbers = #tpu.dot_dimension_numbers<[1], [0], [0], [1], [0, 0, 1, 1], [], []>} : vector<16x32xbf16>, vector<32x32xbf16>, vector<16x32xf32> -> vector<16x32xf32>
    %82 = vector.extract_strided_slice %5 {offsets = [3, 0], sizes = [1, 32], strides = [1, 1]} : vector<10x96xf32> to vector<1x32xf32>
    %83 = vector.broadcast %82 : vector<1x32xf32> to vector<16x32xf32>
    %84 = arith.addf %81, %83 : vector<16x32xf32>
    %85 = arith.addf %84, %0 : vector<16x32xf32>
    %86 = vector.extract_strided_slice %5 {offsets = [4, 0], sizes = [1, 32], strides = [1, 1]} : vector<10x96xf32> to vector<1x32xf32>
    %87 = vector.extract_strided_slice %5 {offsets = [5, 0], sizes = [1, 32], strides = [1, 1]} : vector<10x96xf32> to vector<1x32xf32>
    %cst_27 = arith.constant dense<0.000000e+00> : vector<16xf32>
    %88 = vector.multi_reduction <add>, %85, %cst_27 [1] : vector<16x32xf32> to vector<16xf32>
    %89 = vector.shape_cast %88 : vector<16xf32> to vector<16x1xf32>
    %cst_28 = arith.constant 3.200000e+01 : f32
    %90 = vector.broadcast %cst_28 : f32 to vector<16x1xf32>
    %91 = arith.divf %89, %90 : vector<16x1xf32>
    %92 = vector.broadcast %91 : vector<16x1xf32> to vector<16x32xf32>
    %93 = arith.subf %85, %92 : vector<16x32xf32>
    %94 = arith.mulf %93, %93 : vector<16x32xf32>
    %cst_29 = arith.constant dense<0.000000e+00> : vector<16xf32>
    %95 = vector.multi_reduction <add>, %94, %cst_29 [1] : vector<16x32xf32> to vector<16xf32>
    %96 = vector.shape_cast %95 : vector<16xf32> to vector<16x1xf32>
    %cst_30 = arith.constant 3.200000e+01 : f32
    %97 = vector.broadcast %cst_30 : f32 to vector<16x1xf32>
    %98 = arith.divf %96, %97 : vector<16x1xf32>
    %99 = vector.broadcast %91 : vector<16x1xf32> to vector<16x32xf32>
    %100 = arith.subf %85, %99 : vector<16x32xf32>
    %cst_31 = arith.constant 9.99999974E-6 : f32
    %101 = vector.broadcast %cst_31 : f32 to vector<16x1xf32>
    %102 = arith.addf %98, %101 : vector<16x1xf32>
    %103 = math.rsqrt %102 : vector<16x1xf32>
    %104 = vector.broadcast %103 : vector<16x1xf32> to vector<16x32xf32>
    %105 = arith.mulf %100, %104 : vector<16x32xf32>
    %106 = vector.broadcast %86 : vector<1x32xf32> to vector<16x32xf32>
    %107 = arith.mulf %105, %106 : vector<16x32xf32>
    %108 = vector.broadcast %87 : vector<1x32xf32> to vector<16x32xf32>
    %109 = arith.addf %107, %108 : vector<16x32xf32>
    %110 = vector.broadcast %1 : vector<16x1xf32> to vector<16x32xf32>
    %111 = arith.mulf %109, %110 : vector<16x32xf32>
    %112 = arith.truncf %111 : vector<16x32xf32> to vector<16x32xbf16>
    %c0_32 = arith.constant 0 : index
    %c0_33 = arith.constant 0 : index
    %c0_34 = arith.constant 0 : index
    %113 = vector.load %arg7[%c0_32, %c0_33, %c0_34] : memref<2x32x64xbf16, #tpu.memory_space<vmem>>, vector<1x32x64xbf16>
    %114 = vector.shape_cast %113 : vector<1x32x64xbf16> to vector<32x64xbf16>
    %cst_35 = arith.constant dense<0.000000e+00> : vector<16x64xf32>
    %115 = tpu.matmul %112, %114, %cst_35 {dimension_numbers = #tpu.dot_dimension_numbers<[1], [0], [0], [1], [0, 0, 1, 1], [], []>} : vector<16x32xbf16>, vector<32x64xbf16>, vector<16x64xf32> -> vector<16x64xf32>
    %116 = vector.extract_strided_slice %5 {offsets = [6, 0], sizes = [1, 64], strides = [1, 1]} : vector<10x96xf32> to vector<1x64xf32>
    %117 = vector.broadcast %116 : vector<1x64xf32> to vector<16x64xf32>
    %118 = arith.addf %115, %117 : vector<16x64xf32>
    %cst_36 = arith.constant 0.000000e+00 : f32
    %119 = vector.broadcast %cst_36 : f32 to vector<16x64xf32>
    %120 = arith.maximumf %118, %119 : vector<16x64xf32>
    %121 = arith.truncf %120 : vector<16x64xf32> to vector<16x64xbf16>
    %c0_37 = arith.constant 0 : index
    %c0_38 = arith.constant 0 : index
    %c0_39 = arith.constant 0 : index
    %122 = vector.load %arg8[%c0_37, %c0_38, %c0_39] : memref<2x64x32xbf16, #tpu.memory_space<vmem>>, vector<1x64x32xbf16>
    %123 = vector.shape_cast %122 : vector<1x64x32xbf16> to vector<64x32xbf16>
    %cst_40 = arith.constant dense<0.000000e+00> : vector<16x32xf32>
    %124 = tpu.matmul %121, %123, %cst_40 {dimension_numbers = #tpu.dot_dimension_numbers<[1], [0], [0], [1], [0, 0, 1, 1], [], []>} : vector<16x64xbf16>, vector<64x32xbf16>, vector<16x32xf32> -> vector<16x32xf32>
    %125 = vector.extract_strided_slice %5 {offsets = [7, 0], sizes = [1, 32], strides = [1, 1]} : vector<10x96xf32> to vector<1x32xf32>
    %126 = vector.broadcast %125 : vector<1x32xf32> to vector<16x32xf32>
    %127 = arith.addf %124, %126 : vector<16x32xf32>
    %128 = arith.addf %127, %111 : vector<16x32xf32>
    %129 = vector.extract_strided_slice %5 {offsets = [8, 0], sizes = [1, 32], strides = [1, 1]} : vector<10x96xf32> to vector<1x32xf32>
    %130 = vector.extract_strided_slice %5 {offsets = [9, 0], sizes = [1, 32], strides = [1, 1]} : vector<10x96xf32> to vector<1x32xf32>
    %cst_41 = arith.constant dense<0.000000e+00> : vector<16xf32>
    %131 = vector.multi_reduction <add>, %128, %cst_41 [1] : vector<16x32xf32> to vector<16xf32>
    %132 = vector.shape_cast %131 : vector<16xf32> to vector<16x1xf32>
    %cst_42 = arith.constant 3.200000e+01 : f32
    %133 = vector.broadcast %cst_42 : f32 to vector<16x1xf32>
    %134 = arith.divf %132, %133 : vector<16x1xf32>
    %135 = vector.broadcast %134 : vector<16x1xf32> to vector<16x32xf32>
    %136 = arith.subf %128, %135 : vector<16x32xf32>
    %137 = arith.mulf %136, %136 : vector<16x32xf32>
    %cst_43 = arith.constant dense<0.000000e+00> : vector<16xf32>
    %138 = vector.multi_reduction <add>, %137, %cst_43 [1] : vector<16x32xf32> to vector<16xf32>
    %139 = vector.shape_cast %138 : vector<16xf32> to vector<16x1xf32>
    %cst_44 = arith.constant 3.200000e+01 : f32
    %140 = vector.broadcast %cst_44 : f32 to vector<16x1xf32>
    %141 = arith.divf %139, %140 : vector<16x1xf32>
    %142 = vector.broadcast %134 : vector<16x1xf32> to vector<16x32xf32>
    %143 = arith.subf %128, %142 : vector<16x32xf32>
    %cst_45 = arith.constant 9.99999974E-6 : f32
    %144 = vector.broadcast %cst_45 : f32 to vector<16x1xf32>
    %145 = arith.addf %141, %144 : vector<16x1xf32>
    %146 = math.rsqrt %145 : vector<16x1xf32>
    %147 = vector.broadcast %146 : vector<16x1xf32> to vector<16x32xf32>
    %148 = arith.mulf %143, %147 : vector<16x32xf32>
    %149 = vector.broadcast %129 : vector<1x32xf32> to vector<16x32xf32>
    %150 = arith.mulf %148, %149 : vector<16x32xf32>
    %151 = vector.broadcast %130 : vector<1x32xf32> to vector<16x32xf32>
    %152 = arith.addf %150, %151 : vector<16x32xf32>
    %153 = vector.broadcast %1 : vector<16x1xf32> to vector<16x32xf32>
    %154 = arith.mulf %152, %153 : vector<16x32xf32>
    %c1 = arith.constant 1 : index
    %c0_46 = arith.constant 0 : index
    %c0_47 = arith.constant 0 : index
    %155 = vector.load %arg9[%c1, %c0_46, %c0_47] : memref<2x10x96xf32, #tpu.memory_space<vmem>>, vector<1x10x96xf32>
    %156 = vector.shape_cast %155 : vector<1x10x96xf32> to vector<10x96xf32>
    %157 = arith.truncf %154 : vector<16x32xf32> to vector<16x32xbf16>
    %158 = tpu.concatenate %157, %3 in 0 : vector<16x32xbf16>, vector<128x32xbf16> -> vector<144x32xbf16>
    %c1_48 = arith.constant 1 : index
    %c0_49 = arith.constant 0 : index
    %c0_50 = arith.constant 0 : index
    %159 = vector.load %arg5[%c1_48, %c0_49, %c0_50] : memref<2x32x128xbf16, #tpu.memory_space<vmem>>, vector<1x32x128xbf16>
    %160 = vector.shape_cast %159 : vector<1x32x128xbf16> to vector<32x128xbf16>
    %cst_51 = arith.constant dense<0.000000e+00> : vector<144x128xf32>
    %161 = tpu.matmul %158, %160, %cst_51 {dimension_numbers = #tpu.dot_dimension_numbers<[1], [0], [0], [1], [0, 0, 1, 1], [], []>} : vector<144x32xbf16>, vector<32x128xbf16>, vector<144x128xf32> -> vector<144x128xf32>
    %162 = vector.extract_strided_slice %161 {offsets = [0, 0], sizes = [16, 96], strides = [1, 1]} : vector<144x128xf32> to vector<16x96xf32>
    %163 = vector.extract_strided_slice %156 {offsets = [0, 0], sizes = [1, 96], strides = [1, 1]} : vector<10x96xf32> to vector<1x96xf32>
    %164 = vector.broadcast %163 : vector<1x96xf32> to vector<16x96xf32>
    %165 = arith.addf %162, %164 : vector<16x96xf32>
    %166 = vector.extract_strided_slice %161 {offsets = [16, 96], sizes = [128, 32], strides = [1, 1]} : vector<144x128xf32> to vector<128x32xf32>
    %167 = arith.truncf %166 : vector<128x32xf32> to vector<128x32xbf16>
    %168 = vector.extract_strided_slice %165 {offsets = [0, 0], sizes = [16, 32], strides = [1, 1]} : vector<16x96xf32> to vector<16x32xf32>
    %cst_52 = arith.constant 2.500000e-01 : f32
    %169 = vector.broadcast %cst_52 : f32 to vector<16x32xf32>
    %170 = arith.mulf %168, %169 : vector<16x32xf32>
    %171 = vector.extract_strided_slice %165 {offsets = [0, 32], sizes = [16, 32], strides = [1, 1]} : vector<16x96xf32> to vector<16x32xf32>
    %172 = vector.extract_strided_slice %165 {offsets = [0, 64], sizes = [16, 32], strides = [1, 1]} : vector<16x96xf32> to vector<16x32xf32>
    %173 = vector.extract_strided_slice %156 {offsets = [1, 0], sizes = [1, 32], strides = [1, 1]} : vector<10x96xf32> to vector<1x32xf32>
    %cst_53 = arith.constant 2.500000e-01 : f32
    %174 = vector.broadcast %cst_53 : f32 to vector<1x32xf32>
    %175 = arith.mulf %173, %174 : vector<1x32xf32>
    %176 = vector.extract_strided_slice %156 {offsets = [2, 0], sizes = [1, 32], strides = [1, 1]} : vector<10x96xf32> to vector<1x32xf32>
    %cst_54 = arith.constant 2.500000e-01 : f32
    %177 = vector.broadcast %cst_54 : f32 to vector<1x32xf32>
    %178 = arith.mulf %176, %177 : vector<1x32xf32>
    %179 = vector.broadcast %175 : vector<1x32xf32> to vector<16x32xf32>
    %180 = arith.addf %170, %179 : vector<16x32xf32>
    %181 = arith.truncf %180 : vector<16x32xf32> to vector<16x32xbf16>
    %182 = vector.broadcast %178 : vector<1x32xf32> to vector<16x32xf32>
    %183 = arith.addf %170, %182 : vector<16x32xf32>
    %184 = arith.truncf %183 : vector<16x32xf32> to vector<16x32xbf16>
    %185 = vector.shape_cast %181 : vector<16x32xbf16> to vector<2x8x32xbf16>
    %186 = vector.extract_strided_slice %185 {offsets = [0, 0, 0], sizes = [2, 8, 16], strides = [1, 1, 1]} : vector<2x8x32xbf16> to vector<2x8x16xbf16>
    %187 = vector.extract_strided_slice %185 {offsets = [0, 0, 16], sizes = [2, 8, 16], strides = [1, 1, 1]} : vector<2x8x32xbf16> to vector<2x8x16xbf16>
    %188 = tpu.concatenate %186, %187 in 0 : vector<2x8x16xbf16>, vector<2x8x16xbf16> -> vector<4x8x16xbf16>
    %189 = arith.truncf %171 : vector<16x32xf32> to vector<16x32xbf16>
    %190 = vector.shape_cast %189 : vector<16x32xbf16> to vector<2x8x32xbf16>
    %191 = vector.extract_strided_slice %190 {offsets = [0, 0, 0], sizes = [2, 8, 16], strides = [1, 1, 1]} : vector<2x8x32xbf16> to vector<2x8x16xbf16>
    %192 = vector.extract_strided_slice %190 {offsets = [0, 0, 16], sizes = [2, 8, 16], strides = [1, 1, 1]} : vector<2x8x32xbf16> to vector<2x8x16xbf16>
    %193 = tpu.concatenate %191, %192 in 0 : vector<2x8x16xbf16>, vector<2x8x16xbf16> -> vector<4x8x16xbf16>
    %194 = arith.truncf %172 : vector<16x32xf32> to vector<16x32xbf16>
    %195 = vector.shape_cast %194 : vector<16x32xbf16> to vector<2x8x32xbf16>
    %196 = vector.extract_strided_slice %195 {offsets = [0, 0, 0], sizes = [2, 8, 16], strides = [1, 1, 1]} : vector<2x8x32xbf16> to vector<2x8x16xbf16>
    %197 = vector.extract_strided_slice %195 {offsets = [0, 0, 16], sizes = [2, 8, 16], strides = [1, 1, 1]} : vector<2x8x32xbf16> to vector<2x8x16xbf16>
    %198 = tpu.concatenate %196, %197 in 0 : vector<2x8x16xbf16>, vector<2x8x16xbf16> -> vector<4x8x16xbf16>
    "tpu.trace_start"() <{level = 10 : i32, message = "gid,gjd->gij"}> : () -> ()
    %cst_55 = arith.constant dense<0.000000e+00> : vector<4x8x8xf32>
    %199 = tpu.matmul %188, %193, %cst_55 {dimension_numbers = #tpu.dot_dimension_numbers<[2], [2], [1], [1], [0, 0, 0, 1, 1, 1], [0], [0]>} : vector<4x8x16xbf16>, vector<4x8x16xbf16>, vector<4x8x8xf32> -> vector<4x8x8xf32>
    "tpu.trace_stop"() : () -> ()
    %200 = vector.extract_strided_slice %184 {offsets = [0, 0], sizes = [16, 16], strides = [1, 1]} : vector<16x32xbf16> to vector<16x16xbf16>
    %201 = vector.extract_strided_slice %167 {offsets = [0, 0], sizes = [128, 16], strides = [1, 1]} : vector<128x32xbf16> to vector<128x16xbf16>
    "tpu.trace_start"() <{level = 10 : i32, message = "nd,pd->np"}> : () -> ()
    %cst_56 = arith.constant dense<0.000000e+00> : vector<16x128xf32>
    %202 = tpu.matmul %200, %201, %cst_56 {dimension_numbers = #tpu.dot_dimension_numbers<[1], [1], [0], [0], [0, 0, 1, 0], [], []>} : vector<16x16xbf16>, vector<128x16xbf16>, vector<16x128xf32> -> vector<16x128xf32>
    "tpu.trace_stop"() : () -> ()
    %203 = vector.shape_cast %202 : vector<16x128xf32> to vector<2x8x128xf32>
    %204 = vector.extract_strided_slice %184 {offsets = [0, 16], sizes = [16, 16], strides = [1, 1]} : vector<16x32xbf16> to vector<16x16xbf16>
    %205 = vector.extract_strided_slice %167 {offsets = [0, 16], sizes = [128, 16], strides = [1, 1]} : vector<128x32xbf16> to vector<128x16xbf16>
    "tpu.trace_start"() <{level = 10 : i32, message = "nd,pd->np"}> : () -> ()
    %cst_57 = arith.constant dense<0.000000e+00> : vector<16x128xf32>
    %206 = tpu.matmul %204, %205, %cst_57 {dimension_numbers = #tpu.dot_dimension_numbers<[1], [1], [0], [0], [0, 0, 1, 0], [], []>} : vector<16x16xbf16>, vector<128x16xbf16>, vector<16x128xf32> -> vector<16x128xf32>
    "tpu.trace_stop"() : () -> ()
    %207 = vector.shape_cast %206 : vector<16x128xf32> to vector<2x8x128xf32>
    %208 = tpu.concatenate %203, %207 in 0 : vector<2x8x128xf32>, vector<2x8x128xf32> -> vector<4x8x128xf32>
    %c120_i32_58 = arith.constant 120 : i32
    %209 = tpu.dynamic_rotate %208 by %c120_i32_58 dim 2 {stride = 1 : si32, stride_dimension = 1 : si32} : vector<4x8x128xf32>, i32 -> vector<4x8x128xf32>
    %210 = vector.extract_strided_slice %209 {offsets = [0, 0, 0], sizes = [4, 8, 8], strides = [1, 1, 1]} : vector<4x8x128xf32> to vector<4x8x8xf32>
    %211 = arith.addf %199, %210 : vector<4x8x8xf32>
    %212 = vector.broadcast %2 : vector<4x1x8xf32> to vector<4x8x8xf32>
    %213 = arith.addf %211, %212 : vector<4x8x8xf32>
    %cst_59 = arith.constant dense<0xFF800000> : vector<4x8xf32>
    %214 = vector.multi_reduction <maximumf>, %213, %cst_59 [2] : vector<4x8x8xf32> to vector<4x8xf32>
    %215 = vector.shape_cast %214 : vector<4x8xf32> to vector<4x8x1xf32>
    %216 = vector.broadcast %215 : vector<4x8x1xf32> to vector<4x8x8xf32>
    %217 = arith.subf %213, %216 : vector<4x8x8xf32>
    %218 = math.exp %217 : vector<4x8x8xf32>
    %cst_60 = arith.constant dense<0.000000e+00> : vector<4x8xf32>
    %219 = vector.multi_reduction <add>, %218, %cst_60 [2] : vector<4x8x8xf32> to vector<4x8xf32>
    %220 = vector.shape_cast %219 : vector<4x8xf32> to vector<4x8x1xf32>
    %221 = vector.broadcast %220 : vector<4x8x1xf32> to vector<4x8x8xf32>
    %222 = arith.divf %218, %221 : vector<4x8x8xf32>
    %223 = arith.truncf %222 : vector<4x8x8xf32> to vector<4x8x8xbf16>
    "tpu.trace_start"() <{level = 10 : i32, message = "gij,gjd->gid"}> : () -> ()
    %cst_61 = arith.constant dense<0.000000e+00> : vector<4x8x16xf32>
    %224 = tpu.matmul %223, %198, %cst_61 {dimension_numbers = #tpu.dot_dimension_numbers<[2], [1], [1], [2], [0, 0, 0, 1, 1, 2], [0], [0]>} : vector<4x8x8xbf16>, vector<4x8x16xbf16>, vector<4x8x16xf32> -> vector<4x8x16xf32>
    "tpu.trace_stop"() : () -> ()
    %225 = vector.extract_strided_slice %224 {offsets = [0, 0, 0], sizes = [2, 8, 16], strides = [1, 1, 1]} : vector<4x8x16xf32> to vector<2x8x16xf32>
    %226 = vector.extract_strided_slice %224 {offsets = [2, 0, 0], sizes = [2, 8, 16], strides = [1, 1, 1]} : vector<4x8x16xf32> to vector<2x8x16xf32>
    %227 = tpu.concatenate %225, %226 in 2 : vector<2x8x16xf32>, vector<2x8x16xf32> -> vector<2x8x32xf32>
    %228 = vector.shape_cast %227 : vector<2x8x32xf32> to vector<16x32xf32>
    %229 = arith.truncf %228 : vector<16x32xf32> to vector<16x32xbf16>
    %c1_62 = arith.constant 1 : index
    %c0_63 = arith.constant 0 : index
    %c0_64 = arith.constant 0 : index
    %230 = vector.load %arg6[%c1_62, %c0_63, %c0_64] : memref<2x32x32xbf16, #tpu.memory_space<vmem>>, vector<1x32x32xbf16>
    %231 = vector.shape_cast %230 : vector<1x32x32xbf16> to vector<32x32xbf16>
    %cst_65 = arith.constant dense<0.000000e+00> : vector<16x32xf32>
    %232 = tpu.matmul %229, %231, %cst_65 {dimension_numbers = #tpu.dot_dimension_numbers<[1], [0], [0], [1], [0, 0, 1, 1], [], []>} : vector<16x32xbf16>, vector<32x32xbf16>, vector<16x32xf32> -> vector<16x32xf32>
    %233 = vector.extract_strided_slice %156 {offsets = [3, 0], sizes = [1, 32], strides = [1, 1]} : vector<10x96xf32> to vector<1x32xf32>
    %234 = vector.broadcast %233 : vector<1x32xf32> to vector<16x32xf32>
    %235 = arith.addf %232, %234 : vector<16x32xf32>
    %236 = arith.addf %235, %154 : vector<16x32xf32>
    %237 = vector.extract_strided_slice %156 {offsets = [4, 0], sizes = [1, 32], strides = [1, 1]} : vector<10x96xf32> to vector<1x32xf32>
    %238 = vector.extract_strided_slice %156 {offsets = [5, 0], sizes = [1, 32], strides = [1, 1]} : vector<10x96xf32> to vector<1x32xf32>
    %cst_66 = arith.constant dense<0.000000e+00> : vector<16xf32>
    %239 = vector.multi_reduction <add>, %236, %cst_66 [1] : vector<16x32xf32> to vector<16xf32>
    %240 = vector.shape_cast %239 : vector<16xf32> to vector<16x1xf32>
    %cst_67 = arith.constant 3.200000e+01 : f32
    %241 = vector.broadcast %cst_67 : f32 to vector<16x1xf32>
    %242 = arith.divf %240, %241 : vector<16x1xf32>
    %243 = vector.broadcast %242 : vector<16x1xf32> to vector<16x32xf32>
    %244 = arith.subf %236, %243 : vector<16x32xf32>
    %245 = arith.mulf %244, %244 : vector<16x32xf32>
    %cst_68 = arith.constant dense<0.000000e+00> : vector<16xf32>
    %246 = vector.multi_reduction <add>, %245, %cst_68 [1] : vector<16x32xf32> to vector<16xf32>
    %247 = vector.shape_cast %246 : vector<16xf32> to vector<16x1xf32>
    %cst_69 = arith.constant 3.200000e+01 : f32
    %248 = vector.broadcast %cst_69 : f32 to vector<16x1xf32>
    %249 = arith.divf %247, %248 : vector<16x1xf32>
    %250 = vector.broadcast %242 : vector<16x1xf32> to vector<16x32xf32>
    %251 = arith.subf %236, %250 : vector<16x32xf32>
    %cst_70 = arith.constant 9.99999974E-6 : f32
    %252 = vector.broadcast %cst_70 : f32 to vector<16x1xf32>
    %253 = arith.addf %249, %252 : vector<16x1xf32>
    %254 = math.rsqrt %253 : vector<16x1xf32>
    %255 = vector.broadcast %254 : vector<16x1xf32> to vector<16x32xf32>
    %256 = arith.mulf %251, %255 : vector<16x32xf32>
    %257 = vector.broadcast %237 : vector<1x32xf32> to vector<16x32xf32>
    %258 = arith.mulf %256, %257 : vector<16x32xf32>
    %259 = vector.broadcast %238 : vector<1x32xf32> to vector<16x32xf32>
    %260 = arith.addf %258, %259 : vector<16x32xf32>
    %261 = vector.broadcast %1 : vector<16x1xf32> to vector<16x32xf32>
    %262 = arith.mulf %260, %261 : vector<16x32xf32>
    %263 = arith.truncf %262 : vector<16x32xf32> to vector<16x32xbf16>
    %c1_71 = arith.constant 1 : index
    %c0_72 = arith.constant 0 : index
    %c0_73 = arith.constant 0 : index
    %264 = vector.load %arg7[%c1_71, %c0_72, %c0_73] : memref<2x32x64xbf16, #tpu.memory_space<vmem>>, vector<1x32x64xbf16>
    %265 = vector.shape_cast %264 : vector<1x32x64xbf16> to vector<32x64xbf16>
    %cst_74 = arith.constant dense<0.000000e+00> : vector<16x64xf32>
    %266 = tpu.matmul %263, %265, %cst_74 {dimension_numbers = #tpu.dot_dimension_numbers<[1], [0], [0], [1], [0, 0, 1, 1], [], []>} : vector<16x32xbf16>, vector<32x64xbf16>, vector<16x64xf32> -> vector<16x64xf32>
    %267 = vector.extract_strided_slice %156 {offsets = [6, 0], sizes = [1, 64], strides = [1, 1]} : vector<10x96xf32> to vector<1x64xf32>
    %268 = vector.broadcast %267 : vector<1x64xf32> to vector<16x64xf32>
    %269 = arith.addf %266, %268 : vector<16x64xf32>
    %cst_75 = arith.constant 0.000000e+00 : f32
    %270 = vector.broadcast %cst_75 : f32 to vector<16x64xf32>
    %271 = arith.maximumf %269, %270 : vector<16x64xf32>
    %272 = arith.truncf %271 : vector<16x64xf32> to vector<16x64xbf16>
    %c1_76 = arith.constant 1 : index
    %c0_77 = arith.constant 0 : index
    %c0_78 = arith.constant 0 : index
    %273 = vector.load %arg8[%c1_76, %c0_77, %c0_78] : memref<2x64x32xbf16, #tpu.memory_space<vmem>>, vector<1x64x32xbf16>
    %274 = vector.shape_cast %273 : vector<1x64x32xbf16> to vector<64x32xbf16>
    %cst_79 = arith.constant dense<0.000000e+00> : vector<16x32xf32>
    %275 = tpu.matmul %272, %274, %cst_79 {dimension_numbers = #tpu.dot_dimension_numbers<[1], [0], [0], [1], [0, 0, 1, 1], [], []>} : vector<16x64xbf16>, vector<64x32xbf16>, vector<16x32xf32> -> vector<16x32xf32>
    %276 = vector.extract_strided_slice %156 {offsets = [7, 0], sizes = [1, 32], strides = [1, 1]} : vector<10x96xf32> to vector<1x32xf32>
    %277 = vector.broadcast %276 : vector<1x32xf32> to vector<16x32xf32>
    %278 = arith.addf %275, %277 : vector<16x32xf32>
    %279 = arith.addf %278, %262 : vector<16x32xf32>
    %280 = vector.extract_strided_slice %156 {offsets = [8, 0], sizes = [1, 32], strides = [1, 1]} : vector<10x96xf32> to vector<1x32xf32>
    %281 = vector.extract_strided_slice %156 {offsets = [9, 0], sizes = [1, 32], strides = [1, 1]} : vector<10x96xf32> to vector<1x32xf32>
    %cst_80 = arith.constant dense<0.000000e+00> : vector<16xf32>
    %282 = vector.multi_reduction <add>, %279, %cst_80 [1] : vector<16x32xf32> to vector<16xf32>
    %283 = vector.shape_cast %282 : vector<16xf32> to vector<16x1xf32>
    %cst_81 = arith.constant 3.200000e+01 : f32
    %284 = vector.broadcast %cst_81 : f32 to vector<16x1xf32>
    %285 = arith.divf %283, %284 : vector<16x1xf32>
    %286 = vector.broadcast %285 : vector<16x1xf32> to vector<16x32xf32>
    %287 = arith.subf %279, %286 : vector<16x32xf32>
    %288 = arith.mulf %287, %287 : vector<16x32xf32>
    %cst_82 = arith.constant dense<0.000000e+00> : vector<16xf32>
    %289 = vector.multi_reduction <add>, %288, %cst_82 [1] : vector<16x32xf32> to vector<16xf32>
    %290 = vector.shape_cast %289 : vector<16xf32> to vector<16x1xf32>
    %cst_83 = arith.constant 3.200000e+01 : f32
    %291 = vector.broadcast %cst_83 : f32 to vector<16x1xf32>
    %292 = arith.divf %290, %291 : vector<16x1xf32>
    %293 = vector.broadcast %285 : vector<16x1xf32> to vector<16x32xf32>
    %294 = arith.subf %279, %293 : vector<16x32xf32>
    %cst_84 = arith.constant 9.99999974E-6 : f32
    %295 = vector.broadcast %cst_84 : f32 to vector<16x1xf32>
    %296 = arith.addf %292, %295 : vector<16x1xf32>
    %297 = math.rsqrt %296 : vector<16x1xf32>
    %298 = vector.broadcast %297 : vector<16x1xf32> to vector<16x32xf32>
    %299 = arith.mulf %294, %298 : vector<16x32xf32>
    %300 = vector.broadcast %280 : vector<1x32xf32> to vector<16x32xf32>
    %301 = arith.mulf %299, %300 : vector<16x32xf32>
    %302 = vector.broadcast %281 : vector<1x32xf32> to vector<16x32xf32>
    %303 = arith.addf %301, %302 : vector<16x32xf32>
    %304 = vector.broadcast %1 : vector<16x1xf32> to vector<16x32xf32>
    %305 = arith.mulf %303, %304 : vector<16x32xf32>
    %c0_85 = arith.constant 0 : index
    %c0_86 = arith.constant 0 : index
    %306 = vector.load %arg10[%c0_85, %c0_86] : memref<16x32xf32, #tpu.memory_space<vmem>>, vector<16x32xf32>
    tpu.vector_store %arg10[%c0_85, %c0_86], %305 {strides = array<i32>} : memref<16x32xf32, #tpu.memory_space<vmem>>, vector<16x32xf32>,
    %c0_87 = arith.constant 0 : index
    %c0_88 = arith.constant 0 : index
    %c0_89 = arith.constant 0 : index
    %307 = vector.load %arg11[%c0_87, %c0_88, %c0_89] : memref<4x8x8xf32, #tpu.memory_space<vmem>>, vector<4x8x8xf32>
    tpu.vector_store %arg11[%c0_87, %c0_88, %c0_89], %222 {strides = array<i32>} : memref<4x8x8xf32, #tpu.memory_space<vmem>>, vector<4x8x8xf32>,
    return
  }
  func.func @transform_0(%arg0: i32) -> (i32, i32) {
    %c0_i32 = arith.constant 0 : i32
    %c0_i32_0 = arith.constant 0 : i32
    %c0_i32_1 = arith.constant 0 : i32
    return %c0_i32, %c0_i32_0 : i32, i32
  }
  func.func @transform_1(%arg0: i32) -> (i32, i32) {
    %c0_i32 = arith.constant 0 : i32
    %c0_i32_0 = arith.constant 0 : i32
    %c0_i32_1 = arith.constant 0 : i32
    return %c0_i32, %c0_i32_0 : i32, i32
  }
  func.func @transform_2(%arg0: i32) -> (i32, i32, i32) {
    %c0_i32 = arith.constant 0 : i32
    %c0_i32_0 = arith.constant 0 : i32
    %c0_i32_1 = arith.constant 0 : i32
    %c0_i32_2 = arith.constant 0 : i32
    return %c0_i32, %c0_i32_0, %c0_i32_1 : i32, i32, i32
  }
  func.func @transform_3(%arg0: i32) -> (i32, i32) {
    %c0_i32 = arith.constant 0 : i32
    %c0_i32_0 = arith.constant 0 : i32
    %c0_i32_1 = arith.constant 0 : i32
    return %c0_i32, %c0_i32_0 : i32, i32
  }
  func.func @transform_4(%arg0: i32) -> (i32, i32, i32) {
    %c0_i32 = arith.constant 0 : i32
    %c0_i32_0 = arith.constant 0 : i32
    %c0_i32_1 = arith.constant 0 : i32
    %c0_i32_2 = arith.constant 0 : i32
    return %c0_i32, %c0_i32_0, %c0_i32_1 : i32, i32, i32
  }
  func.func @transform_5(%arg0: i32) -> (i32, i32, i32) {
    %c0_i32 = arith.constant 0 : i32
    %c0_i32_0 = arith.constant 0 : i32
    %c0_i32_1 = arith.constant 0 : i32
    %c0_i32_2 = arith.constant 0 : i32
    return %c0_i32, %c0_i32_0, %c0_i32_1 : i32, i32, i32
  }
  func.func @transform_6(%arg0: i32) -> (i32, i32, i32) {
    %c0_i32 = arith.constant 0 : i32
    %c0_i32_0 = arith.constant 0 : i32
    %c0_i32_1 = arith.constant 0 : i32
    %c0_i32_2 = arith.constant 0 : i32
    return %c0_i32, %c0_i32_0, %c0_i32_1 : i32, i32, i32
  }
  func.func @transform_7(%arg0: i32) -> (i32, i32, i32) {
    %c0_i32 = arith.constant 0 : i32
    %c0_i32_0 = arith.constant 0 : i32
    %c0_i32_1 = arith.constant 0 : i32
    %c0_i32_2 = arith.constant 0 : i32
    return %c0_i32, %c0_i32_0, %c0_i32_1 : i32, i32, i32
  }
  func.func @transform_8(%arg0: i32) -> (i32, i32, i32) {
    %c0_i32 = arith.constant 0 : i32
    %c0_i32_0 = arith.constant 0 : i32
    %c0_i32_1 = arith.constant 0 : i32
    %c0_i32_2 = arith.constant 0 : i32
    return %c0_i32, %c0_i32_0, %c0_i32_1 : i32, i32, i32
  }
  func.func @transform_9(%arg0: i32) -> (i32, i32) {
    %c0_i32 = arith.constant 0 : i32
    %c0_i32_0 = arith.constant 0 : i32
    %c0_i32_1 = arith.constant 0 : i32
    return %c0_i32, %c0_i32_0 : i32, i32
  }
  func.func @transform_10(%arg0: i32) -> (i32, i32, i32) {
    %c0_i32 = arith.constant 0 : i32
    %c0_i32_0 = arith.constant 0 : i32
    %c0_i32_1 = arith.constant 0 : i32
    %c0_i32_2 = arith.constant 0 : i32
    return %c0_i32, %c0_i32_0, %c0_i32_1 : i32, i32, i32
  }
}

</mosaic_0001>

<bundles_post_ra>
// kernel: rel_encoder_forward.1
= control target key start
LH: loop header
LB: loop body
LE: loop exit
PB: predicated region body
PF: predicated region fallthrough
CT: control target
= control target key end

     0   :  { %v3115_v1 = vmov 0.0   ;;  %vm3116_vm0 = vmmov 0   ;;  %vm119_vm1 = vcmask 261120   ;;  %s3893_s0 = inlined_call_operand.vmem [shape: f32[16,32], index: 0, kind: input, shape index: {}]   ;;  %s3894_s1 = inlined_call_operand.vmem [shape: f32[16,1], index: 1, kind: input, shape index: {}]   ;;  %s3895_s2 = inlined_call_operand.vmem [shape: f32[4,1,8], index: 2, kind: input, shape index: {}]   ;;  %s3896_s3 = inlined_call_operand.vmem [shape: bf16[128,32], index: 3, kind: input, shape index: {}]   ;;  %s3897_s4 = inlined_call_operand.vmem [shape: bf16[2,32,128], index: 4, kind: input, shape index: {}]   ;;  %s3898_s5 = inlined_call_operand.vmem [shape: bf16[2,32,32], index: 5, kind: input, shape index: {}]   ;;  %s3899_s6 = inlined_call_operand.vmem [shape: bf16[2,32,64], index: 6, kind: input, shape index: {}]   ;;  %s3900_s7 = inlined_call_operand.vmem [shape: bf16[2,64,32], index: 7, kind: input, shape index: {}]   ;;  %s3901_s8 = inlined_call_operand.vmem [shape: f32[2,10,96], index: 8, kind: input, shape index: {}]   ;;  %s3902_s9 = inlined_call_operand.hbm [shape: f32[16,32], index: 9, kind: output, shape index: {0}]   ;;  %s3903_s10 = inlined_call_operand.vmem [shape: f32[4,8,8], index: 10, kind: output, shape index: {1}]  }
   0x1   :  { %v3003_v0 = vld [vmem:[%s3897_s4] sm:$0xff]   ;;  %2663 = vmatprep.subr.bf16.mxu0 %v3115_v1  ;;  %v3004_v2 = vld [vmem:[%s3897_s4 + $0x8] sm:$0xff]   ;;  %2975 = vmatprep.subr.bf16.mxu1 %v3115_v1  ;;  %v3012_v6 = vld [vmem:[%s3896_s3 + $0x38] sm:$0xff]  }
   0x2   :  { %2664 = vmatpush3.bf16.msra.mxu0 %v3003_v0  ;;  %2667 = vmatprep.mubr.msk.bf16.mxu0 %vm3116_vm0, %v3115_v1  ;;  %v3195_v3 = vld [vmem:[%s3893_s0] sm:$0xff]  ;;  %v3200_v4 = vld [vmem:[%s3893_s0 + $0x8] sm:$0xff] }
   0x3   :  { %2665 = vmatprep.subr.bf16.mxu0 %v3115_v1  ;;  %2977 = vmatpush3.bf16.msra.mxu1 %v3003_v0  ;;  %v62_v5 = vpack.c.bf16 %v3200_v4, %v3195_v3  ;;  %v3005_v7 = vld [vmem:[%s3896_s3] sm:$0xff]   ;;  %v3006_v8 = vld [vmem:[%s3896_s3 + $0x8] sm:$0xff]  }
   0x4   :  { %2976 = vmatprep.subr.bf16.mxu1 %v3115_v1  ;;  %2699 = vmatprep.mubr.msk.bf16.mxu1 %vm3116_vm0, %v3115_v1 }
   0x6   :  { %2666 = vmatpush3.bf16.msra.mxu0 %v3004_v2 }
   0x7   :  { %2978 = vmatpush3.bf16.msra.mxu1 %v3004_v2  ;;  %2723 = vmatprep.subr.bf16.mxu0 %v3115_v1 }
   0x8   :  { %2703 = vmatprep.subr.bf16.mxu1 %v3115_v1 }
   0x9   :  { %2668 = vmatmul.mubr.msk.bf16.vlgmr.msra.gmra.mrb[0].mxu0 %vm119_vm1, %v62_v5 }
   0xa   :  { %2671 = vmatprep.mubr.msk.bf16.mxu0 %vm3116_vm0, %v3115_v1  ;;  %2700 = vmatmul.mubr.msk.bf16.vlgmr.msra.gmra.mrb[0].mxu1 %vm119_vm1, %v3012_v6 }
   0xb   :  { %2719 = vmatprep.mubr.msk.bf16.mxu1 %vm3116_vm0, %v3115_v1 }
  0x11   :  { %2672 = vmatmul.mubr.msk.bf16.gmra.mrb[4].mxu0 %vm119_vm1, %v3005_v7 }
  0x12   :  { %2675 = vmatprep.mubr.msk.bf16.mxu0 %vm3116_vm0, %v3115_v1 }
  0x13   :  { %16 = vsyncpa [#allocation3], 0  ;;  %v3007_v9 = vld [vmem:[%s3896_s3 + $0x10] sm:$0xff]   ;;  %v3008_v10 = vld [vmem:[%s3896_s3 + $0x18] sm:$0xff]   ;;  %v252_v14 = vlaneseq  ;;  %s3117_s18 = smov 16   ;;  %s3118_s19 = smov 32  }
  0x14   :  { %v3009_v11 = vld [vmem:[%s3896_s3 + $0x20] sm:$0xff]   ;;  %v3010_v12 = vld [vmem:[%s3896_s3 + $0x28] sm:$0xff]   ;;  %v3011_v13 = vld [vmem:[%s3896_s3 + $0x30] sm:$0xff]   ;;  %s3119_s20 = smov 112   ;;  %s3120_s0 = smov 96   ;;  %vm326_vm2 = vcmask 130048  }
  0x15   :  { %v3261_v15 = vshrl.u32 %v252_v14, 7  ;;  %v3269_v17 = vld [vmem:[%s3901_s8] sm:$0xff]  ;;  %s3121_s21 = smov 376   ;;  %vm722_vm3 = vcmask 64512   ;;  %s3122_s30 = smov 64   ;;  %vm776_vm4 = vcmask 1043456  }
  0x16   :  { %v268_v19 = vmul.f32 0.25, %v3269_v17  ;;  %vm1196_vm5 = vcmask 523264   ;;  %s3124_s25 = smov [#allocation2]  }
  0x17   :  { %v3264_v16 = vsub.s32 0, %v3261_v15  ;;  %v3275_v20 = vsub.s32 1, %v3261_v15  ;;  %v278_v21 = vsub.s32 2, %v3261_v15  ;;  %s2418_s26 = sshll.u32 %s3124_s25, 4  ;;  %s2419_s26 = int_to_ptr.vmem [resolvable:$true] %s2418_s26 }
  0x18   :  { %p3096_p1 = scmp.lt.s32.totalorder %s2419_s26, %s2419_s26 }
  0x19   :  { %2676 = vmatmul.mubr.msk.bf16.gmra.mrb[8].mxu0 %vm119_vm1, %v3006_v8  ;;  %v255_v18 = vrot.slane %v3269_v17, %v3264_v16  ;;  %v272_v25 = vrot.slane %v268_v19, %v3275_v20  ;;  %v279_v28 = vrot.slane %v268_v19, %v278_v21 }
  0x1a   :  { %2679 = vmatprep.mubr.msk.bf16.mxu0 %vm3116_vm0, %v3115_v1 }
  0x21   :  { %2680 = vmatmul.mubr.msk.bf16.gmra.mrb[12].mxu0 %vm119_vm1, %v3007_v9 }
  0x22   :  { %2683 = vmatprep.mubr.msk.bf16.mxu0 %vm3116_vm0, %v3115_v1 }
  0x29   :  { %2684 = vmatmul.mubr.msk.bf16.gmra.mrb[16].mxu0 %vm119_vm1, %v3008_v10 }
  0x2a   :  { %2687 = vmatprep.mubr.msk.bf16.mxu0 %vm3116_vm0, %v3115_v1 }
  0x31   :  { %2688 = vmatmul.mubr.msk.bf16.gmra.mrb[20].mxu0 %vm119_vm1, %v3009_v11 }
  0x32   :  { %2691 = vmatprep.mubr.msk.bf16.mxu0 %vm3116_vm0, %v3115_v1 }
  0x39   :  { %2692 = vmatmul.mubr.msk.bf16.gmra.mrb[24].mxu0 %vm119_vm1, %v3010_v12 }
  0x3a   :  { %2695 = vmatprep.mubr.msk.bf16.mxu0 %vm3116_vm0, %v3115_v1 }
  0x41   :  { %2696 = vmatmul.mubr.msk.bf16.gmra.mrb[28].mxu0 %vm119_vm1, %v3011_v13 }
  0x42   :  { %2739 = vmatprep.mubr.msk.bf16.mxu0 %vm3116_vm0, %v3115_v1 }
  0xdc   :  { %v181_v22 = vpop.f32.mrb[0].mxu0 }
  0xdd   :  { %v3278_v23 = vadd.f32 %v255_v18, %v181_v22  ;;  %v2669_v24 = vpop.f32.mrb[1].mxu0  ;;  %v245_v31 = vpop.f32.mrb[0].mxu1 }
  0xde   :  { %v184_v26 = vpop.f32.mrb[2].mxu0  ;;  %v2701_v32 = vpop.f32.mrb[1].mxu1 }
  0xdf   :  { %v266_v27 = vmul.f32 0.25, %v3278_v23  ;;  %v3284_v29 = vadd.f32 %v255_v18, %v184_v26  ;;  %v2670_v30 = vpop.f32.mrb[3].mxu0  ;;  %v248_v34 = vpop.f32.mrb[2].mxu1  ;;  %v3319_v22 = vpack.c.bf16 %v3278_v23, %v3278_v23 }
  0xe0   :  { %v3289_v36 = vpack.c.bf16 %v248_v34, %v245_v31  ;;  %v2702_v37 = vpop.f32.mrb[3].mxu1 }
  0xe1   :  { %v267_v33 = vmul.f32 0.25, %v3284_v29  ;;  %v3287_v35 = vadd.f32 %v272_v25, %v266_v27  ;;  %v280_v38 = vadd.f32 %v279_v28, %v266_v27  ;;  %v3311_v19 = vpack.c.bf16 %v3284_v29, %v3284_v29 }
  0xe3   :  { %v281_v39 = vadd.f32 %v279_v28, %v267_v33  ;;  %v3291_v40 = vadd.f32 %v272_v25, %v267_v33 }
  0xe4   :  { %v189_v41 = vpop.f32.mrb[4].mxu0 }
  0xe5   :  { %v2673_v42 = vpop.f32.mrb[5].mxu0  ;;  %v3293_v43 = vpack.c.bf16 %v281_v39, %v280_v38 }
  0xe6   :  { %v192_v44 = vpop.f32.mrb[6].mxu0 }
  0xe7   :  { %v258_v45 = vpack.c.bf16 %v192_v44, %v189_v41  ;;  %v2674_v46 = vpop.f32.mrb[7].mxu0 }
  0xe9   :  { %398 = vrot.lane.b32.xlu1 %v258_v45, %s3117_s18  ;;  %310 = vrot.lane.b32.xlu0 %v258_v45, %s3118_s19 }
  0xec   :  { %v197_v47 = vpop.f32.mrb[8].mxu0 }
  0xed   :  { %v2677_v48 = vpop.f32.mrb[9].mxu0 }
  0xee   :  { %v200_v49 = vpop.f32.mrb[10].mxu0 }
  0xef   :  { %v259_v50 = vpack.c.bf16 %v200_v49, %v197_v47  ;;  %v2678_v51 = vpop.f32.mrb[11].mxu0 }
  0xf1   :  { %312 = vrot.lane.b32.xlu0 %v259_v50, %s3118_s19 }
  0xf4   :  { %v205_v52 = vpop.f32.mrb[12].mxu0 }
  0xf5   :  { %400 = vrot.lane.b32.xlu0 %v259_v50, %s3117_s18  ;;  %v2681_v53 = vpop.f32.mrb[13].mxu0 }
  0xf6   :  { %v208_v54 = vpop.f32.mrb[14].mxu0 }
  0xf7   :  { %v260_v55 = vpack.c.bf16 %v208_v54, %v205_v52  ;;  %v2682_v56 = vpop.f32.mrb[15].mxu0 }
  0xf9   :  { %402 = vrot.lane.b32.xlu0 %v260_v55, %s3117_s18  ;;  %314 = vrot.lane.b32.xlu1 %v260_v55, %s3118_s19 }
  0xfc   :  { %v213_v57 = vpop.f32.mrb[16].mxu0 }
  0xfd   :  { %v2685_v58 = vpop.f32.mrb[17].mxu0 }
  0xfe   :  { %v216_v59 = vpop.f32.mrb[18].mxu0 }
  0xff   :  { %v261_v60 = vpack.c.bf16 %v216_v59, %v213_v57  ;;  %v2686_v61 = vpop.f32.mrb[19].mxu0 }
 0x101   :  { %404 = vrot.lane.b32.xlu0 %v261_v60, %s3117_s18  ;;  %316 = vrot.lane.b32.xlu1 %v261_v60, %s3118_s19  ;;  %v2544_v60 = vpack.c.bf16 %v3291_v40, %v3291_v40 }
 0x104   :  { %v221_v62 = vpop.f32.mrb[20].mxu0 }
 0x105   :  { %v2689_v63 = vpop.f32.mrb[21].mxu0 }
 0x106   :  { %v224_v0 = vpop.f32.mrb[22].mxu0  ;;  %v2543_v63 = vpack.c.bf16 %v3287_v35, %v3287_v35 }
 0x107   :  { %v262_v2 = vpack.c.bf16 %v224_v0, %v221_v62  ;;  %v2690_v5 = vpop.f32.mrb[23].mxu0 }
 0x109   :  { %406 = vrot.lane.b32.xlu0 %v262_v2, %s3117_s18  ;;  %318 = vrot.lane.b32.xlu1 %v262_v2, %s3118_s19 }
 0x10c   :  { %v229_v6 = vpop.f32.mrb[24].mxu0 }
 0x10d   :  { %v2693_v7 = vpop.f32.mrb[25].mxu0 }
 0x10e   :  { %v232_v8 = vpop.f32.mrb[26].mxu0 }
 0x10f   :  { %v263_v9 = vpack.c.bf16 %v232_v8, %v229_v6  ;;  %v2694_v10 = vpop.f32.mrb[27].mxu0 }
 0x111   :  { %408 = vrot.lane.b32.xlu0 %v263_v9, %s3117_s18  ;;  %320 = vrot.lane.b32.xlu1 %v263_v9, %s3118_s19 }
 0x114   :  { %v237_v11 = vpop.f32.mrb[28].mxu0 }
 0x115   :  { %v2697_v12 = vpop.f32.mrb[29].mxu0 }
 0x116   :  { %v240_v13 = vpop.f32.mrb[30].mxu0 }
 0x117   :  { %v264_v14 = vpack.c.bf16 %v240_v13, %v237_v11  ;;  %v2698_v18 = vpop.f32.mrb[31].mxu0 }
 0x119   :  { %410 = vrot.lane.b32.xlu0 %v264_v14, %s3117_s18  ;;  %322 = vrot.lane.b32.xlu1 %v264_v14, %s3118_s19 }
 0x11d   :  { %300 = vrot.lane.b32.xlu0 %v3311_v19, %s3119_s20  ;;  %324 = vrot.lane.b32.xlu1 %v3289_v36, %s3118_s19 }
 0x121   :  { %396 = vrot.lane.b32.xlu0 %v3293_v43, %s3119_s20  ;;  %298 = vrot.lane.b32.xlu1 %v3319_v22, %s3119_s20 }
 0x125   :  { %546 = vrot.lane.b32.xlu0 %v3311_v19, %s3120_s0  ;;  %412 = vrot.lane.b32.xlu1 %v3289_v36, %s3117_s18 }
 0x129   :  { %498 = vrot.lane.b32.xlu1 %v3319_v22, %s3120_s0 }
 0x15b   :  { %v399_v24 = vpop.permute.xlu1 %398  ;;  %v311_v23 = vpop.permute.xlu0 %310 }
 0x15c   :  { %v418_v25 = vsel %vm326_vm2, %v399_v24, 0  ;;  %v331_v26 = vsel %vm326_vm2, %v311_v23, 0 }
 0x15d   :  { %2704 = vmatpush3.bf16.xpose.msra.mxu1 %v331_v26  ;;  %2724 = vmatpush3.bf16.xpose.msra.mxu0 %v418_v25 }
 0x15e   :  { %2705 = vmatprep.subr.bf16.mxu1 %v3115_v1  ;;  %2725 = vmatprep.subr.bf16.mxu0 %v3115_v1 }
 0x163   :  { %v313_v27 = vpop.permute.xlu0 %312 }
 0x164   :  { %v334_v28 = vsel %vm326_vm2, %v313_v27, 0 }
 0x165   :  { %2706 = vmatpush3.bf16.xpose.msra.mxu1 %v334_v28 }
 0x166   :  { %2707 = vmatprep.subr.bf16.mxu1 %v3115_v1 }
 0x167   :  { %v401_v29 = vpop.permute.xlu0 %400 }
 0x168   :  { %v421_v30 = vsel %vm326_vm2, %v401_v29, 0 }
 0x169   :  { %2726 = vmatpush3.bf16.xpose.msra.mxu0 %v421_v30 }
 0x16a   :  { %2727 = vmatprep.subr.bf16.mxu0 %v3115_v1 }
 0x16b   :  { %v315_v31 = vpop.permute.xlu1 %314  ;;  %v403_v33 = vpop.permute.xlu0 %402 }
 0x16c   :  { %v337_v32 = vsel %vm326_vm2, %v315_v31, 0  ;;  %v424_v34 = vsel %vm326_vm2, %v403_v33, 0 }
 0x16d   :  { %2708 = vmatpush3.bf16.xpose.msra.mxu1 %v337_v32 }
 0x16e   :  { %2709 = vmatprep.subr.bf16.mxu1 %v3115_v1 }
 0x171   :  { %2728 = vmatpush3.bf16.xpose.msra.mxu0 %v424_v34 }
 0x172   :  { %2729 = vmatprep.subr.bf16.mxu0 %v3115_v1 }
 0x173   :  { %v317_v36 = vpop.permute.xlu1 %316  ;;  %v405_v38 = vpop.permute.xlu0 %404 }
 0x174   :  { %v340_v37 = vsel %vm326_vm2, %v317_v36, 0  ;;  %v427_v39 = vsel %vm326_vm2, %v405_v38, 0 }
 0x175   :  { %2710 = vmatpush3.bf16.xpose.msra.mxu1 %v340_v37 }
 0x176   :  { %2711 = vmatprep.subr.bf16.mxu1 %v3115_v1 }
 0x179   :  { %2730 = vmatpush3.bf16.xpose.msra.mxu0 %v427_v39  ;;  %v2464_v39 = vld [vmem:[%s3895_s2] ss:$0 sm:$0xff] }
 0x17a   :  { %2731 = vmatprep.subr.bf16.mxu0 %v3115_v1 }
 0x17b   :  { %v319_v41 = vpop.permute.xlu1 %318  ;;  %v407_v44 = vpop.permute.xlu0 %406 }
 0x17c   :  { %v343_v42 = vsel %vm326_vm2, %v319_v41, 0  ;;  %v430_v45 = vsel %vm326_vm2, %v407_v44, 0 }
 0x17d   :  { %2712 = vmatpush3.bf16.xpose.msra.mxu1 %v343_v42 }
 0x17e   :  { %2713 = vmatprep.subr.bf16.mxu1 %v3115_v1 }
 0x181   :  { %2732 = vmatpush3.bf16.xpose.msra.mxu0 %v430_v45 }
 0x182   :  { %2733 = vmatprep.subr.bf16.mxu0 %v3115_v1 }
 0x183   :  { %v321_v46 = vpop.permute.xlu1 %320  ;;  %v409_v48 = vpop.permute.xlu0 %408 }
 0x184   :  { %v346_v47 = vsel %vm326_vm2, %v321_v46, 0  ;;  %v433_v49 = vsel %vm326_vm2, %v409_v48, 0  ;;  %v2465_v46 = vld [vmem:[%s3895_s2 + $0x1] ss:$0 sm:$0xff] }
 0x185   :  { %2714 = vmatpush3.bf16.xpose.msra.mxu1 %v346_v47 }
 0x186   :  { %2715 = vmatprep.subr.bf16.mxu1 %v3115_v1 }
 0x189   :  { %2734 = vmatpush3.bf16.xpose.msra.mxu0 %v433_v49 }
 0x18a   :  { %2735 = vmatprep.subr.bf16.mxu0 %v3115_v1 }
 0x18b   :  { %v411_v50 = vpop.permute.xlu0 %410  ;;  %v323_v51 = vpop.permute.xlu1 %322 }
 0x18c   :  { %v349_v52 = vsel %vm326_vm2, %v323_v51, 0  ;;  %v436_v55 = vsel %vm326_vm2, %v411_v50, 0 }
 0x18d   :  { %2716 = vmatpush3.bf16.xpose.msra.mxu1 %v349_v52  ;;  %v2466_v52 = vld [vmem:[%s3895_s2 + $0x2] ss:$0 sm:$0xff] }
 0x18e   :  { %2717 = vmatprep.subr.bf16.mxu1 %v3115_v1 }
 0x18f   :  { %v301_v53 = vpop.permute.xlu0 %300  ;;  %v325_v54 = vpop.permute.xlu1 %324 }
 0x190   :  { %v3358_v56 = vcombine.low %v301_v53, %v301_v53  ;;  %v352_v58 = vsel %vm326_vm2, %v325_v54, 0 }
 0x191   :  { %2736 = vmatpush3.bf16.xpose.msra.mxu0 %v436_v55 }
 0x192   :  { %646 = vrot.lane.b32.xlu0 %v3358_v56, %s3120_s0  ;;  %2737 = vmatprep.subr.bf16.mxu0 %v3115_v1 }
 0x193   :  { %v299_v57 = vpop.permute.xlu1 %298  ;;  %v397_v40 = vpop.permute.xlu0 %396 }
 0x194   :  { %v3364_v59 = vcombine.low %v299_v57, %v299_v57 }
 0x195   :  { %2718 = vmatpush3.bf16.xpose.msra.mxu1 %v352_v58 }
 0x196   :  { %290 = vrot.lane.b32.xlu0 %v2544_v60, %s3119_s20  ;;  %596 = vrot.lane.b32.xlu1 %v3364_v59, %s3120_s0 }
 0x197   :  { %v413_v61 = vpop.permute.xlu1 %412  ;;  %2743 = vmatprep.subr.bf16.mxu1 %v3115_v1  ;;  %v547_v35 = vpop.permute.xlu0 %546 }
 0x198   :  { %v439_v62 = vsel %vm326_vm2, %v413_v61, 0  ;;  %v552_v5 = vsel %vm326_vm2, %v547_v35, 0 }
 0x199   :  { %2738 = vmatpush3.bf16.xpose.msra.mxu0 %v439_v62 }
 0x19a   :  { %288 = vrot.lane.b32.xlu1 %v2543_v63, %s3119_s20  ;;  %2755 = vmatprep.subr.bf16.mxu0 %v3115_v1 }
 0x19b   :  { %v499_v0 = vpop.permute.xlu1 %498 }
 0x19c   :  { %v504_v2 = vsel %vm326_vm2, %v499_v0, 0  ;;  %2720 = vmatmul.mubr.msk.bf16.vlgmr.msra.gmra.mrb[4].mxu1 %vm326_vm2, %v3293_v43 }
 0x19d   :  { %2744 = vmatpush3.bf16.xpose.msra.mxu1 %v504_v2  ;;  %2745 = vmatprep.mubr.msk.bf16.mxu1 %vm3116_vm0, %v3115_v1 }
 0x19e   :  { %2749 = vmatprep.subr.bf16.mxu1 %v3115_v1 }
 0x1a0   :  { %2740 = vmatmul.mubr.msk.bf16.vlgmr.msra.gmra.mrb[32].mxu0 %vm326_vm2, %v397_v40 }
 0x1a1   :  { %2757 = vmatprep.mubr.msk.bf16.mxu0 %vm3116_vm0, %v3115_v1 }
 0x1a4   :  { %2746 = vmatmul.mubr.msk.bf16.vlgmr.msra.gmra.mrb[8].mxu1 %vm326_vm2, %v2543_v63 }
 0x1a5   :  { %2750 = vmatpush3.bf16.xpose.msra.mxu1 %v552_v5  ;;  %2751 = vmatprep.mubr.msk.bf16.mxu1 %vm3116_vm0, %v3115_v1 }
 0x1a6   :  { %2761 = vmatprep.subr.bf16.mxu1 %v3115_v1 }
 0x1ac   :  { %2752 = vmatmul.mubr.msk.bf16.vlgmr.msra.gmra.mrb[12].mxu1 %vm326_vm2, %v2544_v60  ;;  %v2467_v60 = vld [vmem:[%s3895_s2 + $0x3] ss:$0 sm:$0xff] }
 0x1ad   :  { %2763 = vmatprep.mubr.msk.bf16.mxu1 %vm3116_vm0, %v3115_v1 }
 0x204   :  { %v647_v43 = vpop.permute.xlu0 %646 }
 0x205   :  { %v652_v6 = vsel %vm326_vm2, %v647_v43, 0 }
 0x206   :  { %2762 = vmatpush3.bf16.xpose.msra.mxu1 %v652_v6 }
 0x207   :  { %2773 = vmatprep.subr.bf16.mxu1 %v3115_v1 }
 0x208   :  { %v597_v7 = vpop.permute.xlu1 %596  ;;  %v291_v9 = vpop.permute.xlu0 %290 }
 0x209   :  { %v602_v8 = vsel %vm326_vm2, %v597_v7, 0 }
 0x20a   :  { %2756 = vmatpush3.bf16.xpose.msra.mxu0 %v602_v8 }
 0x20b   :  { %2767 = vmatprep.subr.bf16.mxu0 %v3115_v1 }
 0x20c   :  { %v289_v10 = vpop.permute.xlu1 %288 }
 0x20d   :  { %2764 = vmatmul.mubr.msk.bf16.vlgmr.msra.gmra.mrb[16].mxu1 %vm326_vm2, %v291_v9 }
 0x20e   :  { %2775 = vmatprep.mubr.msk.bf16.mxu1 %vm3116_vm0, %v3115_v1 }
 0x211   :  { %2758 = vmatmul.mubr.msk.bf16.vlgmr.msra.gmra.mrb[36].mxu0 %vm326_vm2, %v289_v10 }
 0x212   :  { %2769 = vmatprep.mubr.msk.bf16.mxu0 %vm3116_vm0, %v3115_v1 }
 0x26f   :  { %v388_v11 = vpop.f32.mrb[4].mxu1 }
 0x270   :  { %v2721_v12 = vpop.f32.mrb[5].mxu1  ;;  %484 = vrot.lane.b32.xlu1 %v388_v11, %s3121_s21 }
 0x271   :  { %v391_v13 = vpop.f32.mrb[6].mxu1 }
 0x272   :  { %488 = vrot.lane.b32.xlu0 %v391_v13, %s3121_s21  ;;  %v2722_v14 = vpop.f32.mrb[7].mxu1 }
 0x273   :  { %v475_v18 = vpop.f32.mrb[32].mxu0 }
 0x274   :  { %492 = vrot.lane.b32.xlu1 %v475_v18, %s3121_s21  ;;  %v2741_v24 = vpop.f32.mrb[33].mxu0 }
 0x275   :  { %v478_v23 = vpop.f32.mrb[34].mxu0 }
 0x276   :  { %496 = vrot.lane.b32.xlu0 %v478_v23, %s3121_s21  ;;  %v2742_v25 = vpop.f32.mrb[35].mxu0 }
 0x277   :  { %v540_v26 = vpop.f32.mrb[8].mxu1 }
 0x278   :  { %v2747_v27 = vpop.f32.mrb[9].mxu1 }
 0x279   :  { %v543_v28 = vpop.f32.mrb[10].mxu1 }
 0x27a   :  { %v2748_v29 = vpop.f32.mrb[11].mxu1 }
 0x27f   :  { %v588_v30 = vpop.f32.mrb[12].mxu1 }
 0x280   :  { %v2753_v31 = vpop.f32.mrb[13].mxu1 }
 0x281   :  { %v591_v32 = vpop.f32.mrb[14].mxu1 }
 0x282   :  { %v2754_v33 = vpop.f32.mrb[15].mxu1 }
 0x2e0   :  { %v688_v34 = vpop.f32.mrb[16].mxu1 }
 0x2e1   :  { %v2765_v36 = vpop.f32.mrb[17].mxu1 }
 0x2e2   :  { %v691_v37 = vpop.f32.mrb[18].mxu1  ;;  %v485_v38 = vpop.permute.xlu1 %484 }
 0x2e3   :  { %v541_v41 = vadd.f32 %v540_v26, %v485_v38  ;;  %v2766_v42 = vpop.f32.mrb[19].mxu1 }
 0x2e4   :  { %v489_v44 = vpop.permute.xlu0 %488  ;;  %v638_v45 = vpop.f32.mrb[36].mxu0 }
 0x2e5   :  { %v589_v47 = vadd.f32 %v588_v30, %v489_v44  ;;  %v2759_v48 = vpop.f32.mrb[37].mxu0  ;;  %v718_v49 = vadd.f32 %v2464_v39, %v541_v41 }
 0x2e6   :  { %v493_v50 = vpop.permute.xlu1 %492  ;;  %v641_v51 = vpop.f32.mrb[38].mxu0 }
 0x2e7   :  { %v639_v53 = vadd.f32 %v638_v45, %v493_v50  ;;  %v2760_v54 = vpop.f32.mrb[39].mxu0  ;;  %v723_v55 = vsel %vm722_vm3, %v718_v49, -inf  ;;  %v719_v57 = vadd.f32 %v2465_v46, %v589_v47 }
 0x2e8   :  { %724 = vmax.xlane.f32.xlu1 %v723_v55  ;;  %v497_v58 = vpop.permute.xlu0 %496 }
 0x2e9   :  { %v689_v61 = vadd.f32 %v688_v34, %v497_v58  ;;  %v726_v62 = vsel %vm722_vm3, %v719_v57, -inf  ;;  %v720_v63 = vadd.f32 %v2466_v52, %v639_v53  ;;  %v3013_v53 = vld [vmem:[%s3898_s5] sm:$0xff]  }
 0x2ea   :  { %727 = vmax.xlane.f32.xlu0 %v726_v62 }
 0x2eb   :  { %v721_v40 = vadd.f32 %v2467_v60, %v689_v61  ;;  %v729_v2 = vsel %vm722_vm3, %v720_v63, -inf }
 0x2ed   :  { %v732_v0 = vsel %vm722_vm3, %v721_v40, -inf }
 0x2ee   :  { %733 = vmax.xlane.f32.xlu1 %v732_v0  ;;  %730 = vmax.xlane.f32.xlu0 %v729_v2 }
 0x2ff   :  { %820 = vrot.lane.b32.xlu1 %v3311_v19, %s3122_s30 }
 0x304   :  { %771 = vrot.lane.b32.xlu0 %v3319_v22, %s3122_s30 }
 0x375   :  { %v725_v35 = vpop.xlane.xlu1 %724 }
 0x376   :  { %v735_v5 = vsub.f32 %v718_v49, %v725_v35 }
 0x377   :  { %v728_v43 = vpop.xlane.xlu0 %727 }
 0x378   :  { %v739_v6 = vmul.f32 1.442695, %v735_v5  ;;  %v736_v7 = vsub.f32 %v719_v57, %v728_v43  ;;  %v3014_v57 = vld [vmem:[%s3898_s5 + $0x8] sm:$0xff]  }
 0x37a   :  { %3031 = vpow2.f32 %v739_v6  ;;  %v741_v8 = vmul.f32 1.442695, %v736_v7 }
 0x37b   :  { %v734_v9 = vpop.xlane.xlu1 %733  ;;  %v731_v10 = vpop.xlane.xlu0 %730 }
 0x37c   :  { %3033 = vpow2.f32 %v741_v8  ;;  %v738_v11 = vsub.f32 %v721_v40, %v734_v9  ;;  %v737_v12 = vsub.f32 %v720_v63, %v731_v10 }
 0x37e   :  { %v745_v13 = vmul.f32 1.442695, %v738_v11  ;;  %v743_v14 = vmul.f32 1.442695, %v737_v12 }
 0x37f   :  { %v821_v18 = vpop.permute.xlu1 %820  ;;  %v772_v19 = vpop.permute.xlu0 %771 }
 0x380   :  { %3035 = vpow2.f32 %v745_v13  ;;  %v826_v22 = vsel %vm776_vm4, %v821_v18, 0  ;;  %v778_v24 = vsel %vm776_vm4, %v772_v19, 0  ;;  %v981_v19 = vsub.s32 3, %v3261_v15 }
 0x381   :  { %3037 = vpow2.f32 %v743_v14  ;;  %2768 = vmatpush3.bf16.msra.mxu0 %v778_v24  ;;  %2774 = vmatpush3.bf16.msra.mxu1 %v826_v22 }
 0x382   :  { %2779 = vmatprep.subr.bf16.mxu0 %v3115_v1  ;;  %2785 = vmatprep.subr.bf16.mxu1 %v3115_v1  ;;  %v982_v22 = vrot.slane %v3269_v17, %v981_v19 }
 0x384   :  { %v3032_v23 = vpop.eup %3031 }
 0x385   :  { %v747_v25 = vsel %vm722_vm3, %v3032_v23, 0.0 }
 0x386   :  { %v3034_v26 = vpop.eup %3033  ;;  %748 = vadd.xlane.f32.xlu0 %v747_v25 }
 0x387   :  { %v750_v27 = vsel %vm722_vm3, %v3034_v26, 0.0 }
 0x388   :  { %751 = vadd.xlane.f32.xlu1 %v750_v27 }
 0x38a   :  { %v3036_v28 = vpop.eup %3035 }
 0x38b   :  { %v3038_v29 = vpop.eup %3037  ;;  %v756_v30 = vsel %vm722_vm3, %v3036_v28, 0.0 }
 0x38c   :  { %757 = vadd.xlane.f32.xlu1 %v756_v30  ;;  %v753_v31 = vsel %vm722_vm3, %v3038_v29, 0.0 }
 0x38d   :  { %754 = vadd.xlane.f32.xlu0 %v753_v31 }
 0x39d   :  { %868 = vrot.lane.b32.xlu1 %v3364_v59, %s3122_s30 }
 0x3a3   :  { %916 = vrot.lane.b32.xlu0 %v3358_v56, %s3122_s30 }
 0x413   :  { %v749_v32 = vpop.xlane.xlu0 %748 }
 0x414   :  { %3039 = vrcp.f32 %v749_v32 }
 0x415   :  { %v752_v33 = vpop.xlane.xlu1 %751 }
 0x416   :  { %3041 = vrcp.f32 %v752_v33  ;;  %v38_v33 = vld [vmem:[%s3894_s1] sm:$0xff] }
 0x419   :  { %v758_v34 = vpop.xlane.xlu1 %757 }
 0x41a   :  { %3043 = vrcp.f32 %v758_v34  ;;  %v755_v36 = vpop.xlane.xlu0 %754  ;;  %v3123_v34 = vmov 0  }
 0x41b   :  { %3045 = vrcp.f32 %v755_v36  ;;  %2996 = vset.pattern.permute.xlu1 %v3123_v34  ;;  %2997 = vset.pattern.permute.xlu0 %v3123_v34 }
 0x41d   :  { %v869_v41 = vpop.permute.xlu1 %868 }
 0x41e   :  { %v3040_v37 = vpop.eup %3039  ;;  %v917_v45 = vpop.permute.xlu0 %916  ;;  %v874_v59 = vsel %vm776_vm4, %v869_v41, 0 }
 0x41f   :  { %v760_v38 = vmul.f32 %v3040_v37, %v3032_v23  ;;  %v922_v48 = vsel %vm776_vm4, %v917_v45, 0 }
 0x420   :  { %v3042_v39 = vpop.eup %3041 }
 0x421   :  { %v762_v42 = vmul.f32 %v3042_v39, %v3034_v26  ;;  %v767_v44 = vpack.c.bf16 %v760_v38, %v760_v38 }
 0x423   :  { %2770 = vmatmul.mubr.msk.bf16.vlgmr.msra.gmra.mrb[40].mxu0 %vm722_vm3, %v767_v44  ;;  %v768_v56 = vpack.c.bf16 %v762_v42, %v762_v42 }
 0x424   :  { %v3044_v46 = vpop.eup %3043  ;;  %2780 = vmatpush3.bf16.msra.mxu0 %v874_v59  ;;  %2781 = vmatprep.mubr.msk.bf16.mxu0 %vm3116_vm0, %v3115_v1  ;;  %v39_v59 = vld [vmem:[%s3894_s1 + $0x8] sm:$0xff] }
 0x425   :  { %v3046_v47 = vpop.eup %3045  ;;  %2776 = vmatmul.mubr.msk.bf16.vlgmr.msra.gmra.mrb[20].mxu1 %vm722_vm3, %v768_v56  ;;  %2791 = vmatprep.subr.bf16.mxu0 %v3115_v1  ;;  %v766_v50 = vmul.f32 %v3044_v46, %v3036_v28  ;;  %v3015_v56 = vld [vmem:[%s3899_s6] sm:$0xff]   ;;  %v3016_v46 = vld [vmem:[%s3899_s6 + $0x8] sm:$0xff]  }
 0x426   :  { %v764_v49 = vmul.f32 %v3046_v47, %v3038_v29  ;;  %2786 = vmatpush3.bf16.msra.mxu1 %v922_v48  ;;  %2787 = vmatprep.mubr.msk.bf16.mxu1 %vm3116_vm0, %v3115_v1  ;;  %v3017_v47 = vld [vmem:[%s3900_s7] sm:$0xff]   ;;  %v3018_v48 = vld [vmem:[%s3900_s7 + $0x8] sm:$0xff]  }
 0x427   :  { %2799 = vmatprep.subr.bf16.mxu1 %v3115_v1  ;;  %v770_v52 = vpack.c.bf16 %v766_v50, %v766_v50 }
 0x428   :  { %v769_v51 = vpack.c.bf16 %v764_v49, %v764_v49 }
 0x42b   :  { %2782 = vmatmul.mubr.msk.bf16.vlgmr.msra.gmra.mrb[44].mxu0 %vm722_vm3, %v769_v51 }
 0x42c   :  { %2795 = vmatprep.mubr.msk.bf16.mxu0 %vm3116_vm0, %v3115_v1  ;;  %2792 = vmatpush3.bf16.msra.mxu0 %v3013_v53 }
 0x42d   :  { %2788 = vmatmul.mubr.msk.bf16.vlgmr.msra.gmra.mrb[24].mxu1 %vm722_vm3, %v770_v52  ;;  %2793 = vmatprep.subr.bf16.mxu0 %v3115_v1 }
 0x42e   :  { %2803 = vmatprep.mubr.msk.bf16.mxu1 %vm3116_vm0, %v3115_v1  ;;  %2800 = vmatpush3.bf16.msra.mxu1 %v3015_v56 }
 0x42f   :  { %2801 = vmatprep.subr.bf16.mxu1 %v3115_v1 }
 0x430   :  { %2794 = vmatpush3.bf16.msra.mxu0 %v3014_v57 }
 0x431   :  { %2807 = vmatprep.subr.bf16.mxu0 %v3115_v1 }
 0x432   :  { %2802 = vmatpush3.bf16.msra.mxu1 %v3016_v46 }
 0x433   :  { %2819 = vmatprep.subr.bf16.mxu1 %v3115_v1 }
 0x4f6   :  { %v814_v54 = vpop.f32.mrb[40].mxu0 }
 0x4f7   :  { %v2771_v55 = vpop.f32.mrb[41].mxu0 }
 0x4f8   :  { %v817_v58 = vpop.f32.mrb[42].mxu0  ;;  %v862_v60 = vpop.f32.mrb[20].mxu1  ;;  %v1070_v55 = vsub.s32 4, %v3261_v15 }
 0x4f9   :  { %v2772_v61 = vpop.f32.mrb[43].mxu0  ;;  %v2777_v62 = vpop.f32.mrb[21].mxu1  ;;  %v1076_v58 = vsub.s32 5, %v3261_v15 }
 0x4fa   :  { %v865_v63 = vpop.f32.mrb[22].mxu1  ;;  %v1071_v57 = vrot.slane %v3269_v17, %v1070_v55 }
 0x4fb   :  { %v2778_v40 = vpop.f32.mrb[23].mxu1  ;;  %v1077_v63 = vrot.slane %v3269_v17, %v1076_v58 }
 0x4fe   :  { %v910_v0 = vpop.f32.mrb[44].mxu0 }
 0x4ff   :  { %v2783_v2 = vpop.f32.mrb[45].mxu0 }
 0x500   :  { %v913_v35 = vpop.f32.mrb[46].mxu0  ;;  %v958_v5 = vpop.f32.mrb[24].mxu1 }
 0x501   :  { %v2991_v43 = vpack.i.bf16 %v958_v5, %v910_v0  ;;  %v2784_v6 = vpop.f32.mrb[47].mxu0  ;;  %v2789_v7 = vpop.f32.mrb[25].mxu1 }
 0x502   :  { %v961_v8 = vpop.f32.mrb[26].mxu1 }
 0x503   :  { %v2790_v9 = vpop.f32.mrb[27].mxu1  ;;  %2992 = vrot.lane.b32.xlu1 %v2991_v43, %s3117_s18 }
 0x575   :  { %v2993_v10 = vpop.permute.xlu1 %2992 }
 0x576   :  { %v2995_v11 = vunpack.i.h.bf16 %v2993_v10  ;;  %v2994_v12 = vunpack.i.l.bf16 %v2993_v10  ;;  %v3019_v10 = vld [vmem:[%s3900_s7 + $0x10] sm:$0xff]  }
 0x578   :  { %v973_v13 = vsel %vm326_vm2, %v862_v60, %v2995_v11  ;;  %v972_v14 = vsel %vm326_vm2, %v814_v54, %v2994_v12  ;;  %v3020_v11 = vld [vmem:[%s3900_s7 + $0x18] sm:$0xff]   ;;  %v1099_v12 = vsub.s32 6, %v3261_v15 }
 0x579   :  { %v974_v18 = vpack.c.bf16 %v973_v13, %v972_v14 }
 0x57a   :  { %v1100_v13 = vrot.slane %v3269_v17, %v1099_v12 }
 0x57b   :  { %2796 = vmatmul.mubr.msk.bf16.vlgmr.msra.gmra.mrb[48].mxu0 %vm119_vm1, %v974_v18 }
 0x57c   :  { %2815 = vmatprep.mubr.msk.bf16.mxu0 %vm3116_vm0, %v3115_v1  ;;  %2808 = vmatpush3.bf16.msra.mxu0 %v3017_v47 }
 0x57d   :  { %2809 = vmatprep.subr.bf16.mxu0 %v3115_v1 }
 0x580   :  { %2810 = vmatpush3.bf16.msra.mxu0 %v3018_v48 }
 0x581   :  { %2811 = vmatprep.subr.bf16.mxu0 %v3115_v1 }
 0x584   :  { %2812 = vmatpush3.bf16.msra.mxu0 %v3019_v10 }
 0x585   :  { %2813 = vmatprep.subr.bf16.mxu0 %v3115_v1 }
 0x588   :  { %2814 = vmatpush3.bf16.msra.mxu0 %v3020_v11 }
 0x589   :  { %2859 = vmatprep.subr.bf16.mxu0 %v3115_v1 }
 0x64e   :  { %v1032_v24 = vpop.f32.mrb[48].mxu0 }
 0x64f   :  { %v1033_v23 = vadd.f32 %v1032_v24, %v982_v22  ;;  %v2797_v25 = vpop.f32.mrb[49].mxu0 }
 0x650   :  { %v1035_v26 = vpop.f32.mrb[50].mxu0 }
 0x651   :  { %v1036_v27 = vadd.f32 %v1035_v26, %v982_v22  ;;  %v2798_v28 = vpop.f32.mrb[51].mxu0  ;;  %v1039_v29 = vadd.f32 %v1033_v23, %v3195_v3 }
 0x653   :  { %v1041_v30 = vsel %vm119_vm1, %v1039_v29, 0.0  ;;  %v1040_v31 = vadd.f32 %v1036_v27, %v3200_v4 }
 0x654   :  { %1042 = vadd.xlane.f32.xlu0 %v1041_v30 }
 0x655   :  { %v1044_v32 = vsel %vm119_vm1, %v1040_v31, 0.0 }
 0x656   :  { %1045 = vadd.xlane.f32.xlu1 %v1044_v32 }
 0x667   :  { %1082 = vperm.xlu1 %2996, %v38_v33  }
 0x6e1   :  { %v1043_v36 = vpop.xlane.xlu0 %1042 }
 0x6e2   :  { %v1048_v37 = vmul.f32 0.03125, %v1043_v36 }
 0x6e3   :  { %v1046_v38 = vpop.xlane.xlu1 %1045 }
 0x6e4   :  { %v1050_v3 = vsub.f32 %v1039_v29, %v1048_v37  ;;  %v1049_v39 = vmul.f32 0.03125, %v1046_v38  ;;  %v1170_v29 = vsub.s32 7, %v3261_v15 }
 0x6e6   :  { %v1051_v41 = vsub.f32 %v1040_v31, %v1049_v39  ;;  %v1052_v42 = vmul.f32 %v1050_v3, %v1050_v3  ;;  %v1171_v30 = vrot.slane %v3269_v17, %v1170_v29 }
 0x6e7   :  { %v3510_v5 = vpop.permute.xlu1 %1082 }
 0x6e8   :  { %v1054_v4 = vsel %vm119_vm1, %v1052_v42, 0.0  ;;  %v1053_v44 = vmul.f32 %v1051_v41, %v1051_v41 }
 0x6e9   :  { %1055 = vadd.xlane.f32.xlu0 %v1054_v4 }
 0x6ea   :  { %v1057_v45 = vsel %vm119_vm1, %v1053_v44, 0.0 }
 0x6ed   :  { %1058 = vadd.xlane.f32.xlu0 %v1057_v45 }
 0x703   :  { %1087 = vperm.xlu0 %2997, %v39_v59  }
 0x776   :  { %v1056_v49 = vpop.xlane.xlu0 %1055 }
 0x777   :  { %v1060_v50 = vmul.f32 0.03125, %v1056_v49  ;;  %v3021_v49 = vld [vmem:[%s3897_s4 + $0x10] sm:$0xff]  }
 0x779   :  { %v1062_v51 = vadd.f32 1e-05, %v1060_v50  ;;  %v3022_v50 = vld [vmem:[%s3897_s4 + $0x18] sm:$0xff]  }
 0x77a   :  { %v1059_v52 = vpop.xlane.xlu0 %1058 }
 0x77b   :  { %3047 = vrsqrt.f32 %v1062_v51  ;;  %v1061_v53 = vmul.f32 0.03125, %v1059_v52 }
 0x77d   :  { %v1063_v54 = vadd.f32 1e-05, %v1061_v53 }
 0x77f   :  { %3049 = vrsqrt.f32 %v1063_v54 }
 0x782   :  { %v3512_v43 = vpop.permute.xlu0 %1087 }
 0x785   :  { %v3048_v60 = vpop.eup %3047 }
 0x786   :  { %v1066_v61 = vmul.f32 %v3048_v60, %v1050_v3 }
 0x788   :  { %v1072_v62 = vmul.f32 %v1071_v57, %v1066_v61  ;;  %v61_v61 = vld [vmem:[%s3901_s8 + $0x8] sm:$0x3] }
 0x789   :  { %v3050_v40 = vpop.eup %3049 }
 0x78a   :  { %v1067_v0 = vmul.f32 %v3050_v40, %v1051_v41  ;;  %v1078_v2 = vadd.f32 %v1077_v63, %v1072_v62  ;;  %v1272_v62 = vrot.slane %v61_v61, %v3264_v16 }
 0x78c   :  { %v1073_v35 = vmul.f32 %v1071_v57, %v1067_v0  ;;  %v1090_v7 = vmul.f32 %v3510_v5, %v1078_v2  ;;  %v1278_v2 = vrot.slane %v61_v61, %v3275_v20 }
 0x78e   :  { %v1079_v6 = vadd.f32 %v1077_v63, %v1073_v35 }
 0x790   :  { %v1091_v8 = vmul.f32 %v3512_v43, %v1079_v6 }
 0x792   :  { %v1092_v9 = vpack.c.bf16 %v1091_v8, %v1090_v7 }
 0x794   :  { %2804 = vmatmul.mubr.msk.bf16.vlgmr.msra.gmra.mrb[28].mxu1 %vm119_vm1, %v1092_v9 }
 0x795   :  { %2823 = vmatprep.mubr.msk.bf16.mxu1 %vm3116_vm0, %v3115_v1  ;;  %2820 = vmatpush3.bf16.msra.mxu1 %v3021_v49 }
 0x796   :  { %2821 = vmatprep.subr.bf16.mxu1 %v3115_v1 }
 0x799   :  { %2822 = vmatpush3.bf16.msra.mxu1 %v3022_v50 }
 0x79a   :  { %2879 = vmatprep.subr.bf16.mxu1 %v3115_v1 }
 0x867   :  { %v1150_v14 = vpop.f32.mrb[28].mxu1 }
 0x868   :  { %v1151_v18 = vadd.f32 %v1150_v14, %v1100_v13  ;;  %v2805_v22 = vpop.f32.mrb[29].mxu1  ;;  %v3079_v14 = vld [vmem:[%s3896_s3] sm:$0xff]  }
 0x869   :  { %v1153_v24 = vpop.f32.mrb[30].mxu1  ;;  %v3081_v22 = vld [vmem:[%s3896_s3 + $0x10] sm:$0xff]  }
 0x86a   :  { %v1154_v23 = vadd.f32 %v1153_v24, %v1100_v13  ;;  %v2806_v25 = vpop.f32.mrb[31].mxu1  ;;  %v1157_v26 = vmax.f32 %v1151_v18, 0.0  ;;  %v3080_v18 = vld [vmem:[%s3896_s3 + $0x8] sm:$0xff]   ;;  %v3082_v24 = vld [vmem:[%s3896_s3 + $0x18] sm:$0xff]  }
 0x86b   :  { %v3084_v25 = vld [vmem:[%s3896_s3 + $0x28] sm:$0xff]  }
 0x86c   :  { %v1158_v27 = vmax.f32 %v1154_v23, 0.0  ;;  %v3083_v23 = vld [vmem:[%s3896_s3 + $0x20] sm:$0xff]  }
 0x86e   :  { %v1159_v28 = vpack.c.bf16 %v1158_v27, %v1157_v26  ;;  %v3085_v26 = vld [vmem:[%s3896_s3 + $0x30] sm:$0xff]   ;;  %v3086_v27 = vld [vmem:[%s3896_s3 + $0x38] sm:$0xff]  }
 0x870   :  { %2816 = vmatmul.mubr.msk.bf16.vlgmr.msra.gmra.mrb[52].mxu0 %vm1196_vm5, %v1159_v28  ;;  %v3617_v28 = vld [vmem:[%s3901_s8 + $0x10] sm:$0xff] }
 0x871   :  { %2875 = vmatprep.mubr.msk.bf16.mxu0 %vm3116_vm0, %v3115_v1 }
 0x943   :  { %v1234_v31 = vpop.f32.mrb[52].mxu0 }
 0x944   :  { %v1235_v32 = vadd.f32 %v1234_v31, %v1171_v30  ;;  %v2817_v33 = vpop.f32.mrb[53].mxu0  ;;  %v1428_v31 = vmul.f32 0.25, %v3617_v28 }
 0x945   :  { %v1237_v34 = vpop.f32.mrb[54].mxu0 }
 0x946   :  { %v1238_v36 = vadd.f32 %v1237_v34, %v1171_v30  ;;  %v2818_v37 = vpop.f32.mrb[55].mxu0  ;;  %v1241_v38 = vadd.f32 %v1235_v32, %v1090_v7  ;;  %v1415_v30 = vrot.slane %v3617_v28, %v3264_v16 }
 0x948   :  { %v1243_v3 = vsel %vm119_vm1, %v1241_v38, 0.0  ;;  %v1242_v39 = vadd.f32 %v1238_v36, %v1091_v8  ;;  %v1432_v36 = vrot.slane %v1428_v31, %v3275_v20 }
 0x949   :  { %1244 = vadd.xlane.f32.xlu1 %v1243_v3  ;;  %v1439_v3 = vrot.slane %v1428_v31, %v278_v21 }
 0x94a   :  { %v1246_v41 = vsel %vm119_vm1, %v1242_v39, 0.0 }
 0x94b   :  { %1247 = vadd.xlane.f32.xlu0 %v1246_v41 }
 0x9d6   :  { %v1245_v42 = vpop.xlane.xlu1 %1244 }
 0x9d7   :  { %v1249_v4 = vmul.f32 0.03125, %v1245_v42 }
 0x9d8   :  { %v1248_v44 = vpop.xlane.xlu0 %1247 }
 0x9d9   :  { %v1251_v45 = vsub.f32 %v1241_v38, %v1249_v4  ;;  %v1250_v59 = vmul.f32 0.03125, %v1248_v44 }
 0x9db   :  { %v1252_v17 = vsub.f32 %v1242_v39, %v1250_v59  ;;  %v1253_v56 = vmul.f32 %v1251_v45, %v1251_v45 }
 0x9dd   :  { %v1255_v46 = vsel %vm119_vm1, %v1253_v56, 0.0  ;;  %v1254_v47 = vmul.f32 %v1252_v17, %v1252_v17 }
 0x9de   :  { %1256 = vadd.xlane.f32.xlu1 %v1255_v46 }
 0x9df   :  { %v1258_v48 = vsel %vm119_vm1, %v1254_v47, 0.0 }
 0x9e2   :  { %1259 = vadd.xlane.f32.xlu1 %v1258_v48 }
 0xa6b   :  { %v1257_v51 = vpop.xlane.xlu1 %1256 }
 0xa6c   :  { %v1261_v52 = vmul.f32 0.03125, %v1257_v51 }
 0xa6e   :  { %v1263_v53 = vadd.f32 1e-05, %v1261_v52 }
 0xa6f   :  { %v1260_v54 = vpop.xlane.xlu1 %1259 }
 0xa70   :  { %3051 = vrsqrt.f32 %v1263_v53  ;;  %v1262_v57 = vmul.f32 0.03125, %v1260_v54 }
 0xa72   :  { %v1264_v60 = vadd.f32 1e-05, %v1262_v57 }
 0xa74   :  { %3053 = vrsqrt.f32 %v1264_v60 }
 0xa7a   :  { %v3052_v63 = vpop.eup %3051 }
 0xa7b   :  { %v1267_v40 = vmul.f32 %v3052_v63, %v1251_v45 }
 0xa7d   :  { %v1273_v0 = vmul.f32 %v1272_v62, %v1267_v40 }
 0xa7e   :  { %v3054_v35 = vpop.eup %3053 }
 0xa7f   :  { %v1268_v6 = vmul.f32 %v3054_v35, %v1252_v17  ;;  %v1279_v8 = vadd.f32 %v1278_v2, %v1273_v0 }
 0xa81   :  { %v1274_v7 = vmul.f32 %v1272_v62, %v1268_v6  ;;  %v3556_v10 = vmul.f32 %v1279_v8, %v3510_v5 }
 0xa83   :  { %v1280_v9 = vadd.f32 %v1278_v2, %v1274_v7 }
 0xa85   :  { %v3559_v11 = vmul.f32 %v1280_v9, %v3512_v43 }
 0xa87   :  { %v1286_v13 = vpack.c.bf16 %v3559_v11, %v3556_v10 }
 0xa89   :  { %2824 = vmatmul.mubr.msk.bf16.vlgmr.msra.gmra.mrb[32].mxu1 %vm119_vm1, %v1286_v13 }
 0xa8a   :  { %2827 = vmatprep.mubr.msk.bf16.mxu1 %vm3116_vm0, %v3115_v1 }
 0xa91   :  { %2828 = vmatmul.mubr.msk.bf16.gmra.mrb[36].mxu1 %vm119_vm1, %v3079_v14 }
 0xa92   :  { %2831 = vmatprep.mubr.msk.bf16.mxu1 %vm3116_vm0, %v3115_v1 }
 0xa99   :  { %2832 = vmatmul.mubr.msk.bf16.gmra.mrb[40].mxu1 %vm119_vm1, %v3080_v18 }
 0xa9a   :  { %2835 = vmatprep.mubr.msk.bf16.mxu1 %vm3116_vm0, %v3115_v1 }
 0xaa1   :  { %2836 = vmatmul.mubr.msk.bf16.gmra.mrb[44].mxu1 %vm119_vm1, %v3081_v22 }
 0xaa2   :  { %2839 = vmatprep.mubr.msk.bf16.mxu1 %vm3116_vm0, %v3115_v1 }
 0xaa9   :  { %2840 = vmatmul.mubr.msk.bf16.gmra.mrb[48].mxu1 %vm119_vm1, %v3082_v24 }
 0xaaa   :  { %2843 = vmatprep.mubr.msk.bf16.mxu1 %vm3116_vm0, %v3115_v1 }
 0xab1   :  { %2844 = vmatmul.mubr.msk.bf16.gmra.mrb[52].mxu1 %vm119_vm1, %v3083_v23 }
 0xab2   :  { %2847 = vmatprep.mubr.msk.bf16.mxu1 %vm3116_vm0, %v3115_v1 }
 0xab9   :  { %2848 = vmatmul.mubr.msk.bf16.gmra.mrb[56].mxu1 %vm119_vm1, %v3084_v25 }
 0xaba   :  { %2851 = vmatprep.mubr.msk.bf16.mxu1 %vm3116_vm0, %v3115_v1 }
 0xac1   :  { %2852 = vmatmul.mubr.msk.bf16.gmra.mrb[60].mxu1 %vm119_vm1, %v3085_v26 }
 0xac2   :  { %2855 = vmatprep.mubr.msk.bf16.mxu1 %vm3116_vm0, %v3115_v1 }
 0xac9   :  { %2856 = vmatmul.mubr.msk.bf16.gmra.mrb[64].mxu1 %vm119_vm1, %v3086_v27 }
 0xaca   :  { %2895 = vmatprep.mubr.msk.bf16.mxu1 %vm3116_vm0, %v3115_v1 }
 0xb5c   :  { %v1341_v32 = vpop.f32.mrb[32].mxu1 }
 0xb5d   :  { %v3622_v33 = vadd.f32 %v1415_v30, %v1341_v32  ;;  %v2825_v34 = vpop.f32.mrb[33].mxu1 }
 0xb5e   :  { %v1344_v37 = vpop.f32.mrb[34].mxu1 }
 0xb5f   :  { %v1426_v38 = vmul.f32 0.25, %v3622_v33  ;;  %v1417_v39 = vadd.f32 %v1415_v30, %v1344_v37  ;;  %v2826_v41 = vpop.f32.mrb[35].mxu1 }
 0xb60   :  { %v3657_v41 = vpack.c.bf16 %v3622_v33, %v3622_v33 }
 0xb61   :  { %v1427_v42 = vmul.f32 0.25, %v1417_v39  ;;  %v3628_v4 = vadd.f32 %v1432_v36, %v1426_v38  ;;  %v1440_v44 = vadd.f32 %v1439_v3, %v1426_v38  ;;  %v3648_v32 = vpack.c.bf16 %v1417_v39, %v1417_v39 }
 0xb63   :  { %v1441_v45 = vadd.f32 %v1439_v3, %v1427_v42  ;;  %v3630_v59 = vadd.f32 %v1432_v36, %v1427_v42 }
 0xb64   :  { %v1349_v17 = vpop.f32.mrb[36].mxu1 }
 0xb65   :  { %v2829_v56 = vpop.f32.mrb[37].mxu1  ;;  %v3632_v46 = vpack.c.bf16 %v1441_v45, %v1440_v44 }
 0xb66   :  { %v1352_v47 = vpop.f32.mrb[38].mxu1 }
 0xb67   :  { %v1418_v48 = vpack.c.bf16 %v1352_v47, %v1349_v17  ;;  %v2830_v49 = vpop.f32.mrb[39].mxu1 }
 0xb69   :  { %1470 = vrot.lane.b32.xlu1 %v1418_v48, %s3118_s19 }
 0xb6c   :  { %v1357_v50 = vpop.f32.mrb[40].mxu1 }
 0xb6d   :  { %1557 = vrot.lane.b32.xlu1 %v1418_v48, %s3117_s18  ;;  %v2833_v21 = vpop.f32.mrb[41].mxu1 }
 0xb6e   :  { %v1360_v51 = vpop.f32.mrb[42].mxu1 }
 0xb6f   :  { %v1419_v52 = vpack.c.bf16 %v1360_v51, %v1357_v50  ;;  %v2834_v53 = vpop.f32.mrb[43].mxu1 }
 0xb71   :  { %1559 = vrot.lane.b32.xlu1 %v1419_v52, %s3117_s18  ;;  %1472 = vrot.lane.b32.xlu0 %v1419_v52, %s3118_s19 }
 0xb74   :  { %v1365_v54 = vpop.f32.mrb[44].mxu1 }
 0xb75   :  { %v2837_v57 = vpop.f32.mrb[45].mxu1 }
 0xb76   :  { %v1368_v60 = vpop.f32.mrb[46].mxu1 }
 0xb77   :  { %v1420_v61 = vpack.c.bf16 %v1368_v60, %v1365_v54  ;;  %v2838_v62 = vpop.f32.mrb[47].mxu1 }
 0xb79   :  { %1474 = vrot.lane.b32.xlu1 %v1420_v61, %s3118_s19 }
 0xb7c   :  { %v1373_v63 = vpop.f32.mrb[48].mxu1 }
 0xb7d   :  { %v2841_v40 = vpop.f32.mrb[49].mxu1 }
 0xb7e   :  { %v1376_v0 = vpop.f32.mrb[50].mxu1 }
 0xb7f   :  { %v1421_v2 = vpack.c.bf16 %v1376_v0, %v1373_v63  ;;  %v2842_v35 = vpop.f32.mrb[51].mxu1 }
 0xb81   :  { %1563 = vrot.lane.b32.xlu0 %v1421_v2, %s3117_s18  ;;  %1476 = vrot.lane.b32.xlu1 %v1421_v2, %s3118_s19 }
 0xb84   :  { %v1381_v6 = vpop.f32.mrb[52].mxu1 }
 0xb85   :  { %1561 = vrot.lane.b32.xlu1 %v1420_v61, %s3117_s18  ;;  %v2845_v7 = vpop.f32.mrb[53].mxu1 }
 0xb86   :  { %v1384_v8 = vpop.f32.mrb[54].mxu1 }
 0xb87   :  { %v1422_v9 = vpack.c.bf16 %v1384_v8, %v1381_v6  ;;  %v2846_v13 = vpop.f32.mrb[55].mxu1 }
 0xb89   :  { %1478 = vrot.lane.b32.xlu1 %v1422_v9, %s3118_s19  ;;  %1565 = vrot.lane.b32.xlu0 %v1422_v9, %s3117_s18 }
 0xb8c   :  { %v1389_v14 = vpop.f32.mrb[56].mxu1 }
 0xb8d   :  { %v2849_v18 = vpop.f32.mrb[57].mxu1 }
 0xb8e   :  { %v1392_v22 = vpop.f32.mrb[58].mxu1  ;;  %v2548_v18 = vpack.c.bf16 %v3630_v59, %v3630_v59  ;;  %v2547_v59 = vpack.c.bf16 %v3628_v4, %v3628_v4 }
 0xb8f   :  { %v1423_v24 = vpack.c.bf16 %v1392_v22, %v1389_v14  ;;  %v2850_v23 = vpop.f32.mrb[59].mxu1 }
 0xb91   :  { %1480 = vrot.lane.b32.xlu1 %v1423_v24, %s3118_s19  ;;  %1567 = vrot.lane.b32.xlu0 %v1423_v24, %s3117_s18 }
 0xb94   :  { %v1397_v25 = vpop.f32.mrb[60].mxu1 }
 0xb95   :  { %v2853_v26 = vpop.f32.mrb[61].mxu1 }
 0xb96   :  { %v1400_v27 = vpop.f32.mrb[62].mxu1 }
 0xb97   :  { %v1424_v30 = vpack.c.bf16 %v1400_v27, %v1397_v25  ;;  %v2854_v31 = vpop.f32.mrb[63].mxu1 }
 0xb99   :  { %1569 = vrot.lane.b32.xlu0 %v1424_v30, %s3117_s18  ;;  %1482 = vrot.lane.b32.xlu1 %v1424_v30, %s3118_s19 }
 0xb9c   :  { %v1405_v34 = vpop.f32.mrb[64].mxu1 }
 0xb9d   :  { %1460 = vrot.lane.b32.xlu0 %v3648_v32, %s3119_s20  ;;  %v2857_v36 = vpop.f32.mrb[65].mxu1 }
 0xb9e   :  { %v1408_v37 = vpop.f32.mrb[66].mxu1 }
 0xb9f   :  { %v1425_v38 = vpack.c.bf16 %v1408_v37, %v1405_v34  ;;  %v2858_v3 = vpop.f32.mrb[67].mxu1 }
 0xba1   :  { %1555 = vrot.lane.b32.xlu0 %v3632_v46, %s3119_s20  ;;  %1484 = vrot.lane.b32.xlu1 %v1425_v38, %s3118_s19 }
 0xba5   :  { %1705 = vrot.lane.b32.xlu0 %v3648_v32, %s3120_s0  ;;  %1458 = vrot.lane.b32.xlu1 %v3657_v41, %s3119_s20 }
 0xba9   :  { %1571 = vrot.lane.b32.xlu1 %v1425_v38, %s3117_s18 }
 0xbad   :  { %1657 = vrot.lane.b32.xlu1 %v3657_v41, %s3120_s0 }
 0xbdb   :  { %v1471_v39 = vpop.permute.xlu1 %1470 }
 0xbdc   :  { %v1490_v42 = vsel %vm326_vm2, %v1471_v39, 0 }
 0xbdd   :  { %2860 = vmatpush3.bf16.xpose.msra.mxu0 %v1490_v42 }
 0xbde   :  { %2861 = vmatprep.subr.bf16.mxu0 %v3115_v1 }
 0xbdf   :  { %v1558_v44 = vpop.permute.xlu1 %1557 }
 0xbe0   :  { %v1577_v33 = vsel %vm326_vm2, %v1558_v44, 0 }
 0xbe1   :  { %2880 = vmatpush3.bf16.xpose.msra.mxu1 %v1577_v33 }
 0xbe2   :  { %2881 = vmatprep.subr.bf16.mxu1 %v3115_v1 }
 0xbe3   :  { %v1473_v45 = vpop.permute.xlu0 %1472  ;;  %v1560_v56 = vpop.permute.xlu1 %1559 }
 0xbe4   :  { %v1493_v17 = vsel %vm326_vm2, %v1473_v45, 0  ;;  %v1580_v47 = vsel %vm326_vm2, %v1560_v56, 0 }
 0xbe5   :  { %2862 = vmatpush3.bf16.xpose.msra.mxu0 %v1493_v17 }
 0xbe6   :  { %2863 = vmatprep.subr.bf16.mxu0 %v3115_v1 }
 0xbe9   :  { %2882 = vmatpush3.bf16.xpose.msra.mxu1 %v1580_v47 }
 0xbea   :  { %2883 = vmatprep.subr.bf16.mxu1 %v3115_v1 }
 0xbeb   :  { %v1475_v48 = vpop.permute.xlu1 %1474 }
 0xbec   :  { %v1496_v49 = vsel %vm326_vm2, %v1475_v48, 0 }
 0xbed   :  { %2864 = vmatpush3.bf16.xpose.msra.mxu0 %v1496_v49 }
 0xbee   :  { %2865 = vmatprep.subr.bf16.mxu0 %v3115_v1 }
 0xbf3   :  { %v1477_v50 = vpop.permute.xlu1 %1476  ;;  %v1564_v57 = vpop.permute.xlu0 %1563 }
 0xbf4   :  { %v1499_v21 = vsel %vm326_vm2, %v1477_v50, 0  ;;  %v1586_v60 = vsel %vm326_vm2, %v1564_v57, 0 }
 0xbf5   :  { %2866 = vmatpush3.bf16.xpose.msra.mxu0 %v1499_v21 }
 0xbf6   :  { %2867 = vmatprep.subr.bf16.mxu0 %v3115_v1 }
 0xbf7   :  { %v1562_v51 = vpop.permute.xlu1 %1561 }
 0xbf8   :  { %v1583_v52 = vsel %vm326_vm2, %v1562_v51, 0 }
 0xbf9   :  { %2884 = vmatpush3.bf16.xpose.msra.mxu1 %v1583_v52 }
 0xbfa   :  { %2885 = vmatprep.subr.bf16.mxu1 %v3115_v1 }
 0xbfb   :  { %v1479_v53 = vpop.permute.xlu1 %1478  ;;  %v1566_v61 = vpop.permute.xlu0 %1565 }
 0xbfc   :  { %v1502_v54 = vsel %vm326_vm2, %v1479_v53, 0  ;;  %v1589_v0 = vsel %vm326_vm2, %v1566_v61, 0 }
 0xbfd   :  { %2868 = vmatpush3.bf16.xpose.msra.mxu0 %v1502_v54 }
 0xbfe   :  { %2869 = vmatprep.subr.bf16.mxu0 %v3115_v1 }
 0xc01   :  { %2886 = vmatpush3.bf16.xpose.msra.mxu1 %v1586_v60 }
 0xc02   :  { %2887 = vmatprep.subr.bf16.mxu1 %v3115_v1 }
 0xc03   :  { %v1481_v62 = vpop.permute.xlu1 %1480  ;;  %v1568_v40 = vpop.permute.xlu0 %1567 }
 0xc04   :  { %v1505_v63 = vsel %vm326_vm2, %v1481_v62, 0  ;;  %v1592_v8 = vsel %vm326_vm2, %v1568_v40, 0 }
 0xc05   :  { %2870 = vmatpush3.bf16.xpose.msra.mxu0 %v1505_v63 }
 0xc06   :  { %2871 = vmatprep.subr.bf16.mxu0 %v3115_v1 }
 0xc09   :  { %2888 = vmatpush3.bf16.xpose.msra.mxu1 %v1589_v0 }
 0xc0a   :  { %2889 = vmatprep.subr.bf16.mxu1 %v3115_v1 }
 0xc0b   :  { %v1570_v2 = vpop.permute.xlu0 %1569  ;;  %v1483_v35 = vpop.permute.xlu1 %1482 }
 0xc0c   :  { %v1508_v6 = vsel %vm326_vm2, %v1483_v35, 0  ;;  %v1595_v24 = vsel %vm326_vm2, %v1570_v2, 0 }
 0xc0d   :  { %2872 = vmatpush3.bf16.xpose.msra.mxu0 %v1508_v6  ;;  %v3087_v6 = vld [vmem:[%s3895_s2] ss:$0 sm:$0xff] }
 0xc0e   :  { %2873 = vmatprep.subr.bf16.mxu0 %v3115_v1 }
 0xc0f   :  { %v1461_v7 = vpop.permute.xlu0 %1460 }
 0xc10   :  { %v3691_v9 = vcombine.low %v1461_v7, %v1461_v7 }
 0xc11   :  { %2890 = vmatpush3.bf16.xpose.msra.mxu1 %v1592_v8 }
 0xc12   :  { %1805 = vrot.lane.b32.xlu0 %v3691_v9, %s3120_s0  ;;  %2891 = vmatprep.subr.bf16.mxu1 %v3115_v1 }
 0xc13   :  { %v1485_v13 = vpop.permute.xlu1 %1484  ;;  %v1556_v26 = vpop.permute.xlu0 %1555 }
 0xc14   :  { %v1511_v14 = vsel %vm326_vm2, %v1485_v13, 0  ;;  %v3088_v13 = vld [vmem:[%s3895_s2 + $0x1] ss:$0 sm:$0xff] }
 0xc15   :  { %2874 = vmatpush3.bf16.xpose.msra.mxu0 %v1511_v14 }
 0xc16   :  { %1450 = vrot.lane.b32.xlu0 %v2548_v18, %s3119_s20  ;;  %2899 = vmatprep.subr.bf16.mxu0 %v3115_v1 }
 0xc17   :  { %v1459_v22 = vpop.permute.xlu1 %1458 }
 0xc18   :  { %v3702_v23 = vcombine.low %v1459_v22, %v1459_v22 }
 0xc19   :  { %2892 = vmatpush3.bf16.xpose.msra.mxu1 %v1595_v24 }
 0xc1a   :  { %1755 = vrot.lane.b32.xlu1 %v3702_v23, %s3120_s0  ;;  %2893 = vmatprep.subr.bf16.mxu1 %v3115_v1 }
 0xc1b   :  { %v1572_v25 = vpop.permute.xlu1 %1571 }
 0xc1c   :  { %2876 = vmatmul.mubr.msk.bf16.vlgmr.msra.gmra.mrb[56].mxu0 %vm326_vm2, %v3632_v46  ;;  %v1598_v30 = vsel %vm326_vm2, %v1572_v25, 0  ;;  %v1706_v46 = vpop.permute.xlu0 %1705 }
 0xc1d   :  { %2901 = vmatprep.mubr.msk.bf16.mxu0 %vm3116_vm0, %v3115_v1  ;;  %v1711_v4 = vsel %vm326_vm2, %v1706_v46, 0  ;;  %v3089_v46 = vld [vmem:[%s3895_s2 + $0x2] ss:$0 sm:$0xff] }
 0xc1e   :  { %1448 = vrot.lane.b32.xlu1 %v2547_v59, %s3119_s20 }
 0xc1f   :  { %v1658_v27 = vpop.permute.xlu1 %1657 }
 0xc20   :  { %v1663_v31 = vsel %vm326_vm2, %v1658_v27, 0 }
 0xc21   :  { %2894 = vmatpush3.bf16.xpose.msra.mxu1 %v1598_v30  ;;  %2900 = vmatpush3.bf16.xpose.msra.mxu0 %v1663_v31 }
 0xc22   :  { %2905 = vmatprep.subr.bf16.mxu1 %v3115_v1  ;;  %2911 = vmatprep.subr.bf16.mxu0 %v3115_v1 }
 0xc28   :  { %2896 = vmatmul.mubr.msk.bf16.vlgmr.msra.gmra.mrb[68].mxu1 %vm326_vm2, %v1556_v26  ;;  %2902 = vmatmul.mubr.msk.bf16.vlgmr.msra.gmra.mrb[60].mxu0 %vm326_vm2, %v2547_v59 }
 0xc29   :  { %2906 = vmatpush3.bf16.xpose.msra.mxu1 %v1711_v4  ;;  %2907 = vmatprep.mubr.msk.bf16.mxu1 %vm3116_vm0, %v3115_v1 }
 0xc2a   :  { %2917 = vmatprep.subr.bf16.mxu1 %v3115_v1  ;;  %2913 = vmatprep.mubr.msk.bf16.mxu0 %vm3116_vm0, %v3115_v1 }
 0xc30   :  { %2908 = vmatmul.mubr.msk.bf16.vlgmr.msra.gmra.mrb[72].mxu1 %vm326_vm2, %v2548_v18 }
 0xc31   :  { %2919 = vmatprep.mubr.msk.bf16.mxu1 %vm3116_vm0, %v3115_v1 }
 0xc84   :  { %v1806_v34 = vpop.permute.xlu0 %1805 }
 0xc85   :  { %v1811_v36 = vsel %vm326_vm2, %v1806_v34, 0 }
 0xc86   :  { %2918 = vmatpush3.bf16.xpose.msra.mxu1 %v1811_v36  ;;  %v3090_v36 = vld [vmem:[%s3895_s2 + $0x3] ss:$0 sm:$0xff] }
 0xc87   :  { %2929 = vmatprep.subr.bf16.mxu1 %v3115_v1 }
 0xc88   :  { %v1451_v37 = vpop.permute.xlu0 %1450 }
 0xc8c   :  { %v1756_v38 = vpop.permute.xlu1 %1755 }
 0xc8d   :  { %v1761_v3 = vsel %vm326_vm2, %v1756_v38, 0  ;;  %2920 = vmatmul.mubr.msk.bf16.vlgmr.msra.gmra.mrb[76].mxu1 %vm326_vm2, %v1451_v37 }
 0xc8e   :  { %2912 = vmatpush3.bf16.xpose.msra.mxu0 %v1761_v3  ;;  %2931 = vmatprep.mubr.msk.bf16.mxu1 %vm3116_vm0, %v3115_v1 }
 0xc8f   :  { %2923 = vmatprep.subr.bf16.mxu0 %v3115_v1 }
 0xc90   :  { %v1449_v39 = vpop.permute.xlu1 %1448 }
 0xc95   :  { %2914 = vmatmul.mubr.msk.bf16.vlgmr.msra.gmra.mrb[64].mxu0 %vm326_vm2, %v1449_v39 }
 0xc96   :  { %2925 = vmatprep.mubr.msk.bf16.mxu0 %vm3116_vm0, %v3115_v1 }
 0xcef   :  { %v1547_v42 = vpop.f32.mrb[56].mxu0 }
 0xcf0   :  { %1643 = vrot.lane.b32.xlu1 %v1547_v42, %s3121_s21  ;;  %v2877_v44 = vpop.f32.mrb[57].mxu0 }
 0xcf1   :  { %v1550_v33 = vpop.f32.mrb[58].mxu0 }
 0xcf2   :  { %1647 = vrot.lane.b32.xlu0 %v1550_v33, %s3121_s21  ;;  %v2878_v45 = vpop.f32.mrb[59].mxu0 }
 0xcfb   :  { %v1634_v17 = vpop.f32.mrb[68].mxu1  ;;  %v1699_v56 = vpop.f32.mrb[60].mxu0 }
 0xcfc   :  { %v2897_v47 = vpop.f32.mrb[69].mxu1  ;;  %1651 = vrot.lane.b32.xlu1 %v1634_v17, %s3121_s21  ;;  %v2903_v48 = vpop.f32.mrb[61].mxu0 }
 0xcfd   :  { %v1637_v49 = vpop.f32.mrb[70].mxu1  ;;  %v1702_v50 = vpop.f32.mrb[62].mxu0 }
 0xcfe   :  { %v2898_v21 = vpop.f32.mrb[71].mxu1  ;;  %1655 = vrot.lane.b32.xlu0 %v1637_v49, %s3121_s21  ;;  %v2904_v51 = vpop.f32.mrb[63].mxu0 }
 0xd03   :  { %v1747_v52 = vpop.f32.mrb[72].mxu1 }
 0xd04   :  { %v2909_v53 = vpop.f32.mrb[73].mxu1 }
 0xd05   :  { %v1750_v54 = vpop.f32.mrb[74].mxu1 }
 0xd06   :  { %v2910_v57 = vpop.f32.mrb[75].mxu1 }
 0xd60   :  { %v1847_v60 = vpop.f32.mrb[76].mxu1 }
 0xd61   :  { %v2921_v61 = vpop.f32.mrb[77].mxu1 }
 0xd62   :  { %v1850_v62 = vpop.f32.mrb[78].mxu1  ;;  %v1644_v63 = vpop.permute.xlu1 %1643 }
 0xd63   :  { %v1700_v40 = vadd.f32 %v1699_v56, %v1644_v63  ;;  %v2922_v0 = vpop.f32.mrb[79].mxu1 }
 0xd64   :  { %v1648_v2 = vpop.permute.xlu0 %1647 }
 0xd65   :  { %v1748_v35 = vadd.f32 %v1747_v52, %v1648_v2  ;;  %v1853_v7 = vadd.f32 %v3087_v6, %v1700_v40 }
 0xd67   :  { %v1857_v8 = vsel %vm722_vm3, %v1853_v7, -inf  ;;  %v1854_v14 = vadd.f32 %v3088_v13, %v1748_v35 }
 0xd68   :  { %1858 = vmax.xlane.f32.xlu1 %v1857_v8  ;;  %v1797_v18 = vpop.f32.mrb[64].mxu0 }
 0xd69   :  { %v2915_v22 = vpop.f32.mrb[65].mxu0  ;;  %v1860_v24 = vsel %vm722_vm3, %v1854_v14, -inf }
 0xd6a   :  { %1861 = vmax.xlane.f32.xlu0 %v1860_v24  ;;  %v1800_v25 = vpop.f32.mrb[66].mxu0 }
 0xd6b   :  { %v2916_v59 = vpop.f32.mrb[67].mxu0 }
 0xd6e   :  { %v1652_v26 = vpop.permute.xlu1 %1651 }
 0xd6f   :  { %v1798_v27 = vadd.f32 %v1797_v18, %v1652_v26 }
 0xd70   :  { %v1656_v30 = vpop.permute.xlu0 %1655 }
 0xd71   :  { %v1848_v31 = vadd.f32 %v1847_v60, %v1656_v30  ;;  %v1855_v4 = vadd.f32 %v3089_v46, %v1798_v27  ;;  %v3023_v46 = vld [vmem:[%s3898_s5 + $0x10] sm:$0xff]  }
 0xd73   :  { %v1863_v34 = vsel %vm722_vm3, %v1855_v4, -inf  ;;  %v1856_v37 = vadd.f32 %v3090_v36, %v1848_v31 }
 0xd74   :  { %1864 = vmax.xlane.f32.xlu0 %v1863_v34 }
 0xd75   :  { %v1866_v38 = vsel %vm722_vm3, %v1856_v37, -inf }
 0xd76   :  { %1867 = vmax.xlane.f32.xlu1 %v1866_v38 }
 0xd87   :  { %1953 = vrot.lane.b32.xlu1 %v3648_v32, %s3122_s30 }
 0xd8a   :  { %1905 = vrot.lane.b32.xlu0 %v3657_v41, %s3122_s30 }
 0xdf5   :  { %v1859_v3 = vpop.xlane.xlu1 %1858 }
 0xdf6   :  { %v1869_v39 = vsub.f32 %v1853_v7, %v1859_v3 }
 0xdf7   :  { %v1862_v42 = vpop.xlane.xlu0 %1861 }
 0xdf8   :  { %v1873_v44 = vmul.f32 1.442695, %v1869_v39  ;;  %v1870_v33 = vsub.f32 %v1854_v14, %v1862_v42 }
 0xdfa   :  { %3055 = vpow2.f32 %v1873_v44  ;;  %v1875_v45 = vmul.f32 1.442695, %v1870_v33  ;;  %v3024_v44 = vld [vmem:[%s3898_s5 + $0x18] sm:$0xff]  }
 0xdfc   :  { %3057 = vpow2.f32 %v1875_v45 }
 0xe01   :  { %v1865_v17 = vpop.xlane.xlu0 %1864 }
 0xe02   :  { %v1871_v56 = vsub.f32 %v1855_v4, %v1865_v17 }
 0xe03   :  { %v1868_v47 = vpop.xlane.xlu1 %1867 }
 0xe04   :  { %v3056_v48 = vpop.eup %3055  ;;  %v1877_v49 = vmul.f32 1.442695, %v1871_v56  ;;  %v1872_v50 = vsub.f32 %v1856_v37, %v1868_v47 }
 0xe05   :  { %v1906_v21 = vpop.permute.xlu0 %1905  ;;  %v1881_v32 = vsel %vm722_vm3, %v3056_v48, 0.0 }
 0xe06   :  { %v3058_v51 = vpop.eup %3057  ;;  %3059 = vpow2.f32 %v1877_v49  ;;  %v1879_v41 = vmul.f32 1.442695, %v1872_v50  ;;  %v1911_v52 = vsel %vm776_vm4, %v1906_v21, 0  ;;  %1882 = vadd.xlane.f32.xlu0 %v1881_v32 }
 0xe07   :  { %v1954_v53 = vpop.permute.xlu1 %1953  ;;  %2924 = vmatpush3.bf16.msra.mxu0 %v1911_v52  ;;  %v1884_v54 = vsel %vm722_vm3, %v3058_v51, 0.0 }
 0xe08   :  { %3061 = vpow2.f32 %v1879_v41  ;;  %v1959_v57 = vsel %vm776_vm4, %v1954_v53, 0  ;;  %1885 = vadd.xlane.f32.xlu1 %v1884_v54  ;;  %2935 = vmatprep.subr.bf16.mxu0 %v3115_v1 }
 0xe09   :  { %2930 = vmatpush3.bf16.msra.mxu1 %v1959_v57  ;;  %v2116_v57 = vrot.slane %v3617_v28, %v981_v19 }
 0xe0a   :  { %2941 = vmatprep.subr.bf16.mxu1 %v3115_v1 }
 0xe10   :  { %v3060_v60 = vpop.eup %3059 }
 0xe11   :  { %v1887_v61 = vsel %vm722_vm3, %v3060_v60, 0.0 }
 0xe12   :  { %v3062_v62 = vpop.eup %3061  ;;  %1888 = vadd.xlane.f32.xlu0 %v1887_v61 }
 0xe13   :  { %v1890_v63 = vsel %vm722_vm3, %v3062_v62, 0.0 }
 0xe14   :  { %1891 = vadd.xlane.f32.xlu1 %v1890_v63 }
 0xe25   :  { %2001 = vrot.lane.b32.xlu1 %v3702_v23, %s3122_s30 }
 0xe28   :  { %2049 = vrot.lane.b32.xlu0 %v3691_v9, %s3122_s30 }
 0xe93   :  { %v1883_v40 = vpop.xlane.xlu0 %1882 }
 0xe94   :  { %3063 = vrcp.f32 %v1883_v40 }
 0xe95   :  { %v1886_v0 = vpop.xlane.xlu1 %1885 }
 0xe96   :  { %3065 = vrcp.f32 %v1886_v0 }
 0xe9e   :  { %v3064_v2 = vpop.eup %3063 }
 0xe9f   :  { %v1894_v35 = vmul.f32 %v3064_v2, %v3056_v48  ;;  %v1889_v6 = vpop.xlane.xlu0 %1888 }
 0xea0   :  { %v3066_v7 = vpop.eup %3065  ;;  %3067 = vrcp.f32 %v1889_v6 }
 0xea1   :  { %2409 = vst.msk [vmem:[%s3903_s10] sm:$0xff] %vm722_vm3, %v1894_v35  ;;  %v1896_v8 = vmul.f32 %v3066_v7, %v3058_v51  ;;  %v1892_v13 = vpop.xlane.xlu1 %1891  ;;  %v1901_v23 = vpack.c.bf16 %v1894_v35, %v1894_v35 }
 0xea2   :  { %3069 = vrcp.f32 %v1892_v13 }
 0xea3   :  { %2410 = vst.msk [vmem:[%s3903_s10 + $0x8] sm:$0xff] %vm722_vm3, %v1896_v8  ;;  %2926 = vmatmul.mubr.msk.bf16.vlgmr.msra.gmra.mrb[68].mxu0 %vm722_vm3, %v1901_v23  ;;  %v2050_v9 = vpop.permute.xlu0 %2049  ;;  %v1902_v14 = vpack.c.bf16 %v1896_v8, %v1896_v8 }
 0xea4   :  { %v2055_v18 = vsel %vm776_vm4, %v2050_v9, 0  ;;  %2937 = vmatprep.mubr.msk.bf16.mxu0 %vm3116_vm0, %v3115_v1 }
 0xea5   :  { %2932 = vmatmul.mubr.msk.bf16.vlgmr.msra.gmra.mrb[80].mxu1 %vm722_vm3, %v1902_v14  ;;  %v2002_v22 = vpop.permute.xlu1 %2001 }
 0xea6   :  { %v2007_v24 = vsel %vm776_vm4, %v2002_v22, 0  ;;  %2942 = vmatpush3.bf16.msra.mxu1 %v2055_v18  ;;  %2943 = vmatprep.mubr.msk.bf16.mxu1 %vm3116_vm0, %v3115_v1 }
 0xea7   :  { %2936 = vmatpush3.bf16.msra.mxu0 %v2007_v24  ;;  %2955 = vmatprep.subr.bf16.mxu1 %v3115_v1 }
 0xea8   :  { %2947 = vmatprep.subr.bf16.mxu0 %v3115_v1 }
 0xeaa   :  { %v3068_v25 = vpop.eup %3067 }
 0xeab   :  { %v1898_v59 = vmul.f32 %v3068_v25, %v3060_v60  ;;  %v3026_v25 = vld [vmem:[%s3899_s6 + $0x18] sm:$0xff]  }
 0xeac   :  { %v3070_v26 = vpop.eup %3069 }
 0xead   :  { %2411 = vst.msk [vmem:[%s3903_s10 + $0x10] sm:$0xff] %vm722_vm3, %v1898_v59  ;;  %v1900_v27 = vmul.f32 %v3070_v26, %v3062_v62  ;;  %v1903_v30 = vpack.c.bf16 %v1898_v59, %v1898_v59  ;;  %v3027_v59 = vld [vmem:[%s3900_s7 + $0x20] sm:$0xff]   ;;  %v3028_v26 = vld [vmem:[%s3900_s7 + $0x28] sm:$0xff]  }
 0xeaf   :  { %2412 = vst.msk [vmem:[%s3903_s10 + $0x18] sm:$0xff] %vm722_vm3, %v1900_v27  ;;  %2938 = vmatmul.mubr.msk.bf16.vlgmr.msra.gmra.mrb[72].mxu0 %vm722_vm3, %v1903_v30  ;;  %v1904_v31 = vpack.c.bf16 %v1900_v27, %v1900_v27 }
 0xeb0   :  { %2951 = vmatprep.mubr.msk.bf16.mxu0 %vm3116_vm0, %v3115_v1  ;;  %2948 = vmatpush3.bf16.msra.mxu0 %v3023_v46 }
 0xeb1   :  { %2944 = vmatmul.mubr.msk.bf16.vlgmr.msra.gmra.mrb[84].mxu1 %vm722_vm3, %v1904_v31  ;;  %2949 = vmatprep.subr.bf16.mxu0 %v3115_v1 }
 0xeb2   :  { %2959 = vmatprep.mubr.msk.bf16.mxu1 %vm3116_vm0, %v3115_v1 }
 0xeb4   :  { %2950 = vmatpush3.bf16.msra.mxu0 %v3024_v44 }
 0xeb5   :  { %2963 = vmatprep.subr.bf16.mxu0 %v3115_v1 }
 0xf76   :  { %v1947_v4 = vpop.f32.mrb[68].mxu0 }
 0xf77   :  { %v2927_v34 = vpop.f32.mrb[69].mxu0 }
 0xf78   :  { %v1950_v36 = vpop.f32.mrb[70].mxu0  ;;  %v1995_v37 = vpop.f32.mrb[80].mxu1 }
 0xf79   :  { %v2928_v38 = vpop.f32.mrb[71].mxu0  ;;  %v2933_v3 = vpop.f32.mrb[81].mxu1  ;;  %v2204_v36 = vrot.slane %v3617_v28, %v1070_v55  ;;  %v3029_v55 = vld [vmem:[%s3900_s7 + $0x30] sm:$0xff]  }
 0xf7a   :  { %v1998_v39 = vpop.f32.mrb[82].mxu1  ;;  %v2210_v38 = vrot.slane %v3617_v28, %v1076_v58  ;;  %v3030_v58 = vld [vmem:[%s3900_s7 + $0x38] sm:$0xff]  }
 0xf7b   :  { %v2934_v42 = vpop.f32.mrb[83].mxu1 }
 0xf82   :  { %v2043_v33 = vpop.f32.mrb[72].mxu0 }
 0xf83   :  { %v2939_v45 = vpop.f32.mrb[73].mxu0 }
 0xf84   :  { %v2046_v17 = vpop.f32.mrb[74].mxu0  ;;  %v2091_v56 = vpop.f32.mrb[84].mxu1 }
 0xf85   :  { %v2998_v47 = vpack.i.bf16 %v2091_v56, %v2043_v33  ;;  %v2940_v48 = vpop.f32.mrb[75].mxu0  ;;  %v2945_v49 = vpop.f32.mrb[85].mxu1 }
 0xf86   :  { %v2094_v50 = vpop.f32.mrb[86].mxu1  ;;  %v2224_v49 = vrot.slane %v3617_v28, %v1099_v12 }
 0xf87   :  { %v2946_v21 = vpop.f32.mrb[87].mxu1  ;;  %2999 = vrot.lane.b32.xlu1 %v2998_v47, %s3117_s18 }
 0xff9   :  { %v3000_v32 = vpop.permute.xlu1 %2999 }
 0xffa   :  { %v3002_v51 = vunpack.i.h.bf16 %v3000_v32  ;;  %v3001_v41 = vunpack.i.l.bf16 %v3000_v32 }
 0xffc   :  { %v2106_v52 = vsel %vm326_vm2, %v1995_v37, %v3002_v51  ;;  %v2105_v53 = vsel %vm326_vm2, %v1947_v4, %v3001_v41 }
 0xffd   :  { %v2107_v54 = vpack.c.bf16 %v2106_v52, %v2105_v53 }
 0xfff   :  { %2952 = vmatmul.mubr.msk.bf16.vlgmr.msra.gmra.mrb[76].mxu0 %vm119_vm1, %v2107_v54 }
0x1000   :  { %2971 = vmatprep.mubr.msk.bf16.mxu0 %vm3116_vm0, %v3115_v1  ;;  %2964 = vmatpush3.bf16.msra.mxu0 %v3027_v59  ;;  %v2484_v59 = vld [vmem:[%s3901_s8 + $0x18] sm:$0x3]  ;;  %s3091_s8 = scalar_lea.vmem %s2419_s26, 256 }
0x1001   :  { %2965 = vmatprep.subr.bf16.mxu0 %v3115_v1  ;;  %p3092_p0 = scmp.ne.s32.totalorder %s2419_s26, %s3091_s8  ;;  %p3097_p2 = scmp.lt.s32.totalorder %s3091_s8, %s3091_s8 }
0x1003   :  { %p3098_p3 = por %p3097_p2, %p3096_p1 }
0x1004   :  { %2966 = vmatpush3.bf16.msra.mxu0 %v3028_v26  ;;  %v2396_v26 = vrot.slane %v2484_v59, %v3264_v16 }
0x1005   :  { %2967 = vmatprep.subr.bf16.mxu0 %v3115_v1  ;;  %p3099_p4 = pnand %p3098_p3, %p3092_p0 }
0x1008   :  { %2968 = vmatpush3.bf16.msra.mxu0 %v3029_v55 }
0x1009   :  { %2969 = vmatprep.subr.bf16.mxu0 %v3115_v1 }
0x100c   :  { %2970 = vmatpush3.bf16.msra.mxu0 %v3030_v58 }
0x10d2   :  { %v2166_v60 = vpop.f32.mrb[76].mxu0 }
0x10d3   :  { %v2167_v61 = vadd.f32 %v2166_v60, %v2116_v57  ;;  %v2953_v62 = vpop.f32.mrb[77].mxu0 }
0x10d4   :  { %v2169_v63 = vpop.f32.mrb[78].mxu0 }
0x10d5   :  { %v2170_v40 = vadd.f32 %v2169_v63, %v2116_v57  ;;  %v2954_v0 = vpop.f32.mrb[79].mxu0  ;;  %v2173_v2 = vadd.f32 %v2167_v61, %v3556_v10 }
0x10d7   :  { %v2174_v35 = vadd.f32 %v2170_v40, %v3559_v11  ;;  %v2175_v6 = vsel %vm119_vm1, %v2173_v2, 0.0  ;;  %v3025_v11 = vld [vmem:[%s3899_s6 + $0x10] sm:$0xff]  }
0x10d8   :  { %2176 = vadd.xlane.f32.xlu0 %v2175_v6  ;;  %2956 = vmatpush3.bf16.msra.mxu1 %v3025_v11 }
0x10d9   :  { %v2178_v7 = vsel %vm119_vm1, %v2174_v35, 0.0  ;;  %2957 = vmatprep.subr.bf16.mxu1 %v3115_v1  ;;  %v2296_v1 = vrot.slane %v3617_v28, %v1170_v29 }
0x10da   :  { %2179 = vadd.xlane.f32.xlu1 %v2178_v7 }
0x10dc   :  { %2958 = vmatpush3.bf16.msra.mxu1 %v3026_v25 }
0x1165   :  { %v2177_v8 = vpop.xlane.xlu0 %2176 }
0x1166   :  { %v2181_v13 = vmul.f32 0.03125, %v2177_v8 }
0x1167   :  { %v2180_v23 = vpop.xlane.xlu1 %2179 }
0x1168   :  { %v2183_v19 = vsub.f32 %v2173_v2, %v2181_v13  ;;  %v2182_v9 = vmul.f32 0.03125, %v2180_v23 }
0x116a   :  { %v2184_v14 = vsub.f32 %v2174_v35, %v2182_v9  ;;  %v2185_v18 = vmul.f32 %v2183_v19, %v2183_v19 }
0x116c   :  { %v2187_v22 = vsel %vm119_vm1, %v2185_v18, 0.0  ;;  %v2186_v24 = vmul.f32 %v2184_v14, %v2184_v14 }
0x116d   :  { %2188 = vadd.xlane.f32.xlu0 %v2187_v22 }
0x116e   :  { %v2190_v10 = vsel %vm119_vm1, %v2186_v24, 0.0 }
0x1171   :  { %2191 = vadd.xlane.f32.xlu0 %v2190_v10 }
0x11fa   :  { %v2189_v27 = vpop.xlane.xlu0 %2188 }
0x11fb   :  { %v2193_v30 = vmul.f32 0.03125, %v2189_v27 }
0x11fd   :  { %v2195_v31 = vadd.f32 1e-05, %v2193_v30 }
0x11fe   :  { %v2192_v46 = vpop.xlane.xlu0 %2191 }
0x11ff   :  { %3071 = vrsqrt.f32 %v2195_v31  ;;  %v2194_v4 = vmul.f32 0.03125, %v2192_v46  ;;  %v2402_v31 = vrot.slane %v2484_v59, %v3275_v20 }
0x1201   :  { %v2196_v34 = vadd.f32 1e-05, %v2194_v4 }
0x1203   :  { %3073 = vrsqrt.f32 %v2196_v34 }
0x1209   :  { %v3072_v37 = vpop.eup %3071 }
0x120a   :  { %v2199_v3 = vmul.f32 %v3072_v37, %v2183_v19 }
0x120c   :  { %v2205_v39 = vmul.f32 %v2204_v36, %v2199_v3 }
0x120d   :  { %v3074_v42 = vpop.eup %3073 }
0x120e   :  { %v2200_v44 = vmul.f32 %v3074_v42, %v2184_v14  ;;  %v2211_v33 = vadd.f32 %v2210_v38, %v2205_v39 }
0x1210   :  { %v2206_v45 = vmul.f32 %v2204_v36, %v2200_v44  ;;  %v2213_v56 = vmul.f32 %v2211_v33, %v3510_v5 }
0x1212   :  { %v2212_v17 = vadd.f32 %v2210_v38, %v2206_v45 }
0x1214   :  { %v2214_v47 = vmul.f32 %v2212_v17, %v3512_v43 }
0x1216   :  { %v2215_v48 = vpack.c.bf16 %v2214_v47, %v2213_v56 }
0x1218   :  { %2960 = vmatmul.mubr.msk.bf16.vlgmr.msra.gmra.mrb[88].mxu1 %vm119_vm1, %v2215_v48 }
0x12eb   :  { %v2274_v50 = vpop.f32.mrb[88].mxu1 }
0x12ec   :  { %v2275_v21 = vadd.f32 %v2274_v50, %v2224_v49  ;;  %v2961_v32 = vpop.f32.mrb[89].mxu1 }
0x12ed   :  { %v2277_v51 = vpop.f32.mrb[90].mxu1 }
0x12ee   :  { %v2278_v41 = vadd.f32 %v2277_v51, %v2224_v49  ;;  %v2962_v52 = vpop.f32.mrb[91].mxu1  ;;  %v2281_v53 = vmax.f32 %v2275_v21, 0.0 }
0x12f0   :  { %v2282_v54 = vmax.f32 %v2278_v41, 0.0 }
0x12f2   :  { %v2283_v57 = vpack.c.bf16 %v2282_v54, %v2281_v53 }
0x12f4   :  { %2972 = vmatmul.mubr.msk.bf16.vlgmr.msra.gmra.mrb[80].mxu0 %vm1196_vm5, %v2283_v57 }
0x13c7   :  { %v2358_v60 = vpop.f32.mrb[80].mxu0 }
0x13c8   :  { %v2359_v61 = vadd.f32 %v2358_v60, %v2296_v1  ;;  %v2973_v62 = vpop.f32.mrb[81].mxu0 }
0x13c9   :  { %v2361_v63 = vpop.f32.mrb[82].mxu0 }
0x13ca   :  { %v2365_v12 = vadd.f32 %v2359_v61, %v2213_v56  ;;  %v2362_v40 = vadd.f32 %v2361_v63, %v2296_v1  ;;  %v2974_v0 = vpop.f32.mrb[83].mxu0 }
0x13cc   :  { %v2367_v2 = vsel %vm119_vm1, %v2365_v12, 0.0  ;;  %v2366_v35 = vadd.f32 %v2362_v40, %v2214_v47 }
0x13cd   :  { %2368 = vadd.xlane.f32.xlu1 %v2367_v2 }
0x13ce   :  { %v2370_v6 = vsel %vm119_vm1, %v2366_v35, 0.0 }
0x13cf   :  { %2371 = vadd.xlane.f32.xlu0 %v2370_v6 }
0x145a   :  { %v2369_v7 = vpop.xlane.xlu1 %2368 }
0x145b   :  { %v2373_v8 = vmul.f32 0.03125, %v2369_v7 }
0x145c   :  { %v2372_v13 = vpop.xlane.xlu0 %2371 }
0x145d   :  { %v2375_v15 = vsub.f32 %v2365_v12, %v2373_v8  ;;  %v2374_v23 = vmul.f32 0.03125, %v2372_v13 }
0x145f   :  { %v2376_v29 = vsub.f32 %v2366_v35, %v2374_v23  ;;  %v2377_v28 = vmul.f32 %v2375_v15, %v2375_v15 }
0x1461   :  { %v2379_v19 = vsel %vm119_vm1, %v2377_v28, 0.0  ;;  %v2378_v9 = vmul.f32 %v2376_v29, %v2376_v29 }
0x1462   :  { %2380 = vadd.xlane.f32.xlu1 %v2379_v19 }
0x1463   :  { %v2382_v14 = vsel %vm119_vm1, %v2378_v9, 0.0 }
0x1464   :  { %2383 = vadd.xlane.f32.xlu0 %v2382_v14 }
0x14ef   :  { %v2381_v18 = vpop.xlane.xlu1 %2380 }
0x14f0   :  { %v2385_v22 = vmul.f32 0.03125, %v2381_v18 }
0x14f1   :  { %v2384_v24 = vpop.xlane.xlu0 %2383 }
0x14f2   :  { %v2387_v10 = vadd.f32 1e-05, %v2385_v22  ;;  %v2386_v11 = vmul.f32 0.03125, %v2384_v24 }
0x14f4   :  { %3075 = vrsqrt.f32 %v2387_v10  ;;  %v2388_v25 = vadd.f32 1e-05, %v2386_v11 }
0x14f6   :  { %3077 = vrsqrt.f32 %v2388_v25 }
0x14fe   :  { %v3076_v27 = vpop.eup %3075 }
0x14ff   :  { %v2391_v30 = vmul.f32 %v3076_v27, %v2375_v15 }
0x1500   :  { %v3078_v46 = vpop.eup %3077 }
0x1501   :  { %v2397_v4 = vmul.f32 %v2396_v26, %v2391_v30  ;;  %v2392_v34 = vmul.f32 %v3078_v46, %v2376_v29 }
0x1503   :  { %v2398_v36 = vmul.f32 %v2396_v26, %v2392_v34  ;;  %v2403_v37 = vadd.f32 %v2402_v31, %v2397_v4 }
0x1505   :  { %v2404_v38 = vadd.f32 %v2402_v31, %v2398_v36  ;;  %v2405_v3 = vmul.f32 %v2403_v37, %v3510_v5 }
0x1507   :  { %v2406_v39 = vmul.f32 %v2404_v38, %v3512_v43  ;;  %2407 = vst.msk [vmem:[#allocation2] sm:$0xff] %vm119_vm1, %v2405_v3 }
0x1509   :  { %2408 = vst.msk [vmem:[#allocation2 + $0x8] sm:$0xff] %vm119_vm1, %v2406_v39 }
0x150a   :  { %3102 = shalt.err (!%p3099_p4)
}
0x150b   :  { %s3103_s28 = scalar_lea.hbm %s3902_s9, 256 }
0x150c   :  { %p3104_p5 = scmp.ne.s32.totalorder %s3902_s9, %s3103_s28  ;;  %p3107_p6 = scmp.lt.u32.totalorder %s3103_s28, %s3902_s9 }
0x150e   :  { %p3109_p7 = pnand %p3107_p6, %p3104_p5 }
0x1510   :  { %3112 = shalt.err (!%p3109_p7)
}
0x1511   :  { %s3125_s12 = smov 128   ;;  %s3126_s13 = smov 8  }
0x1512   :  { %2424 = dma.vmem_to_hbm [thread:$0]  %s2419_s26, 256, %s3902_s9, [#allocation3], %s3125_s12, %s3125_s12, %s3126_s13  }
0x1513   :  { %3113 = dma.done.wait [#allocation3], 256  }
0x1514   :  { %3114 = vsyncadd [#allocation3], 4294967040 }
0x1515   :  { %2432 = vsyncpa [#allocation3], 1 }

</bundles_post_ra>
